<compile_context>
chip_gen: v5e
topology: v5e:2x2
jax: 0.10.0
libtpu: 0.0.40
codegen_flags: <defaults>
</compile_context>

<pallas_src>
import functools

import jax
import jax.numpy as jnp
from jax import lax
from jax.experimental import pallas as pl
from jax.experimental.pallas import tpu as pltpu


# ---------------------------------------------------------------------------
# Fused attention kernel: one grid step = (batch b, head h, q-row tile i)
# ---------------------------------------------------------------------------
def _attention_kernel(scale, xq_ref, xk_ref, wq_ref, wk_ref, o_ref, k_sc):
    # ---- k projection: once per (batch, head), kept resident in VMEM scratch ----
    @pl.when(pl.program_id(2) == 0)
    def _():
        xk = xk_ref[0].astype(jnp.bfloat16)                 # (C, HW)
        wk = wk_ref[0]                                      # (D, C)  bf16
        kT = jnp.dot(wk, xk, preferred_element_type=jnp.float32)   # (D, HW) f32 acc
        k_sc[...] = kT.astype(jnp.bfloat16)

    # ---- q projection for this row tile ----
    xq = xq_ref[0].astype(jnp.bfloat16)                     # (C, TQ)
    wq = wq_ref[0]                                          # (D, C)  bf16
    qT = jnp.dot(wq, xq, preferred_element_type=jnp.float32)       # (D, TQ) f32

    # ---- scaled similarity (MXU, bf16 in / f32 acc) ----
    s = lax.dot_general(qT.astype(jnp.bfloat16), k_sc[...],
                        (((0,), (0,)), ((), ())),
                        preferred_element_type=jnp.float32)         # (TQ, HW)
    s = s * scale

    # ---- row softmax in f32 ----
    m = jnp.max(s, axis=-1, keepdims=True)
    p = jnp.exp(s - m)
    inv = 1.0 / jnp.sum(p, axis=-1, keepdims=True)
    attn = p * inv

    o_ref[...] = attn[None, None].astype(o_ref.dtype)


def _pick_q_tile(hw, max_tile=512):
    """Largest lane-friendly q-row tile that divides H*W (full block if small)."""
    if hw <= max_tile:
        return hw
    for t in (512, 384, 256, 128):
        if hw % t == 0:
            return t
    return hw  # ragged H*W: fall back to a single full-row block


# ---------------------------------------------------------------------------
# Public wrapper: fmap (b, dim, h, w) NCHW, W_qk (2*heads*dim_head, dim)
# returns attn (b, heads, h*w, h*w), identical semantics to Attention.forward.
# ---------------------------------------------------------------------------
def attention_forward(fmap, w_qk, *, heads, dim_head):
    b, c, h, w = fmap.shape
    hw = h * w
    inner = heads * dim_head
    scale = float(dim_head) ** -0.5

    # NCHW -> (b, C, H*W): free reshape, no transpose / extra HBM round trip.
    x3 = fmap.reshape(b, c, hw)

    # Per-head projection weights (heads, dim_head, C); PyTorch Conv2d weight rows
    # are ordered (head, d) so this is a pure reshape.  Stored bf16 for the MXU.
    wq = w_qk[:inner].reshape(heads, dim_head, c).astype(jnp.bfloat16)
    wk = w_qk[inner:].reshape(heads, dim_head, c).astype(jnp.bfloat16)

    tq = _pick_q_tile(hw)
    grid = (b, heads, hw // tq)

    return pl.pallas_call(
        functools.partial(_attention_kernel, scale),
        out_shape=jax.ShapeDtypeStruct((b, heads, hw, hw), jnp.float32),
        grid_spec=pltpu.PrefetchScalarGridSpec(
            num_scalar_prefetch=0,
            grid=grid,
            in_specs=[
                # x columns for the current q-row tile
                pl.BlockSpec((1, c, tq), lambda bb, hh, ii: (bb, 0, ii)),
                # full feature map for the (once-per-(b,h)) k projection
                pl.BlockSpec((1, c, hw), lambda bb, hh, ii: (bb, 0, 0)),
                pl.BlockSpec((1, dim_head, c), lambda bb, hh, ii: (hh, 0, 0)),
                pl.BlockSpec((1, dim_head, c), lambda bb, hh, ii: (hh, 0, 0)),
            ],
            out_specs=pl.BlockSpec((1, 1, tq, hw), lambda bb, hh, ii: (bb, hh, ii, 0)),
            scratch_shapes=[pltpu.VMEM((dim_head, hw), jnp.bfloat16)],
        ),
        compiler_params=pltpu.CompilerParams(
            dimension_semantics=("parallel", "parallel", "arbitrary")),
    )(x3, x3, wq, wk)


# ---------------------------------------------------------------------------
# Pure-JAX reference (mirrors the PyTorch module, f32) for a sanity check.
# ---------------------------------------------------------------------------
def attention_reference(fmap, w_qk, *, heads, dim_head):
    b, c, h, w = fmap.shape
    scale = float(dim_head) ** -0.5
    qk = jnp.einsum('bchw,oc->bohw', fmap, w_qk)
    q, k = jnp.split(qk, 2, axis=1)

    def rearr(t):  # 'b (h d) x y -> b h x y d'
        return t.reshape(b, heads, dim_head, h, w).transpose(0, 1, 3, 4, 2)

    q = rearr(q) * scale
    k = rearr(k)
    sim = jnp.einsum('bhxyd,bhuvd->bhxyuv', q, k).reshape(b, heads, h * w, h * w)
    return jax.nn.softmax(sim, axis=-1)


if __name__ == "__main__":
    key = jax.random.PRNGKey(0)

    # Small shapes consistent with the module defaults (heads=4, dim_head=128).
    b, dim, h, w = 2, 128, 16, 16
    heads, dim_head = 4, 128
    inner = heads * dim_head

    k1, k2 = jax.random.split(key)
    fmap = jax.random.normal(k1, (b, dim, h, w), jnp.float32)
    # Conv2d(dim, 2*inner, 1, bias=False) weight, squeezed to (2*inner, dim).
    w_qk = jax.random.normal(k2, (2 * inner, dim), jnp.float32) * (dim ** -0.5)

    attn = attention_forward(fmap, w_qk, heads=heads, dim_head=dim_head)
    attn = jax.block_until_ready(attn)

    assert attn.shape == (b, heads, h * w, h * w), attn.shape
    assert bool(jnp.all(jnp.isfinite(attn)))
    row_sums = jnp.sum(attn, axis=-1)
    assert bool(jnp.all(jnp.abs(row_sums - 1.0) < 1e-3))

    ref = attention_reference(fmap, w_qk, heads=heads, dim_head=dim_head)
    max_err = float(jnp.max(jnp.abs(attn - ref)))
    assert max_err < 2e-2, f"max abs err vs reference: {max_err}"

    print("KERNEL_OK")
</pallas_src>

<mosaic_0001>
module attributes {stable_mosaic.version = 11 : i64} {
  func.func @_attention_kernel(%arg0: i32, %arg1: i32, %arg2: i32, %arg3: memref<1x128x256xf32, #tpu.memory_space<vmem>>, %arg4: memref<1x128x256xf32, #tpu.memory_space<vmem>>, %arg5: memref<1x128x128xbf16, #tpu.memory_space<vmem>>, %arg6: memref<1x128x128xbf16, #tpu.memory_space<vmem>>, %arg7: memref<1x1x256x256xf32, #tpu.memory_space<vmem>>, %arg8: memref<128x256xbf16, #tpu.memory_space<vmem>>) attributes {dimension_semantics = [#tpu.dimension_semantics<parallel>, #tpu.dimension_semantics<parallel>, #tpu.dimension_semantics<arbitrary>], iteration_bounds = array<i64: 2, 4, 1>, scalar_prefetch = 0 : i64, scratch_operands = 1 : i64, tpu.core_type = #tpu.core_type<tc>, window_params = [{transform_indices = @transform_0, window_bounds = array<i64: 1, 128, 256>}, {transform_indices = @transform_1, window_bounds = array<i64: 1, 128, 256>}, {transform_indices = @transform_2, window_bounds = array<i64: 1, 128, 128>}, {transform_indices = @transform_3, window_bounds = array<i64: 1, 128, 128>}, {transform_indices = @transform_4, window_bounds = array<i64: 1, 1, 256, 256>}]} {
    %c0_i32 = arith.constant 0 : i32
    %0 = arith.cmpi eq, %arg2, %c0_i32 : i32
    %1 = arith.extui %0 : i1 to i32
    %c0_i32_0 = arith.constant 0 : i32
    %2 = arith.cmpi ne, %1, %c0_i32_0 : i32
    scf.if %2 {
      %c0_17 = arith.constant 0 : index
      %c0_18 = arith.constant 0 : index
      %c0_19 = arith.constant 0 : index
      %27 = vector.load %arg4[%c0_17, %c0_18, %c0_19] : memref<1x128x256xf32, #tpu.memory_space<vmem>>, vector<1x128x256xf32>
      %28 = vector.shape_cast %27 : vector<1x128x256xf32> to vector<128x256xf32>
      %29 = arith.truncf %28 : vector<128x256xf32> to vector<128x256xbf16>
      %c0_20 = arith.constant 0 : index
      %c0_21 = arith.constant 0 : index
      %c0_22 = arith.constant 0 : index
      %30 = vector.load %arg6[%c0_20, %c0_21, %c0_22] : memref<1x128x128xbf16, #tpu.memory_space<vmem>>, vector<1x128x128xbf16>
      %31 = vector.shape_cast %30 : vector<1x128x128xbf16> to vector<128x128xbf16>
      %cst_23 = arith.constant dense<0.000000e+00> : vector<128x256xf32>
      %32 = tpu.matmul %31, %29, %cst_23 {dimension_numbers = #tpu.dot_dimension_numbers<[1], [0], [0], [1], [0, 0, 1, 1], [], []>} : vector<128x128xbf16>, vector<128x256xbf16>, vector<128x256xf32> -> vector<128x256xf32>
      %33 = arith.truncf %32 : vector<128x256xf32> to vector<128x256xbf16>
      %c0_24 = arith.constant 0 : index
      %c0_25 = arith.constant 0 : index
      %34 = vector.load %arg8[%c0_24, %c0_25] : memref<128x256xbf16, #tpu.memory_space<vmem>>, vector<128x256xbf16>
      tpu.vector_store %arg8[%c0_24, %c0_25], %33 {strides = array<i32>} : memref<128x256xbf16, #tpu.memory_space<vmem>>, vector<128x256xbf16>,
    } else {
    }
    %c0 = arith.constant 0 : index
    %c0_1 = arith.constant 0 : index
    %c0_2 = arith.constant 0 : index
    %3 = vector.load %arg3[%c0, %c0_1, %c0_2] : memref<1x128x256xf32, #tpu.memory_space<vmem>>, vector<1x128x256xf32>
    %4 = vector.shape_cast %3 : vector<1x128x256xf32> to vector<128x256xf32>
    %5 = arith.truncf %4 : vector<128x256xf32> to vector<128x256xbf16>
    %c0_3 = arith.constant 0 : index
    %c0_4 = arith.constant 0 : index
    %c0_5 = arith.constant 0 : index
    %6 = vector.load %arg5[%c0_3, %c0_4, %c0_5] : memref<1x128x128xbf16, #tpu.memory_space<vmem>>, vector<1x128x128xbf16>
    %7 = vector.shape_cast %6 : vector<1x128x128xbf16> to vector<128x128xbf16>
    %cst = arith.constant dense<0.000000e+00> : vector<128x256xf32>
    %8 = tpu.matmul %7, %5, %cst {dimension_numbers = #tpu.dot_dimension_numbers<[1], [0], [0], [1], [0, 0, 1, 1], [], []>} : vector<128x128xbf16>, vector<128x256xbf16>, vector<128x256xf32> -> vector<128x256xf32>
    %9 = arith.truncf %8 : vector<128x256xf32> to vector<128x256xbf16>
    %c0_6 = arith.constant 0 : index
    %c0_7 = arith.constant 0 : index
    %10 = vector.load %arg8[%c0_6, %c0_7] : memref<128x256xbf16, #tpu.memory_space<vmem>>, vector<128x256xbf16>
    %cst_8 = arith.constant dense<0.000000e+00> : vector<256x256xf32>
    %11 = tpu.matmul %9, %10, %cst_8 {dimension_numbers = #tpu.dot_dimension_numbers<[0], [0], [1], [1], [0, 1, 1, 1], [], []>} : vector<128x256xbf16>, vector<128x256xbf16>, vector<256x256xf32> -> vector<256x256xf32>
    %cst_9 = arith.constant 0.0883883461 : f32
    %12 = vector.broadcast %cst_9 : f32 to vector<256x256xf32>
    %13 = arith.mulf %11, %12 : vector<256x256xf32>
    %cst_10 = arith.constant dense<0xFF800000> : vector<256xf32>
    %14 = vector.multi_reduction <maximumf>, %13, %cst_10 [1] : vector<256x256xf32> to vector<256xf32>
    %15 = vector.shape_cast %14 : vector<256xf32> to vector<256x1xf32>
    %16 = vector.broadcast %15 : vector<256x1xf32> to vector<256x256xf32>
    %17 = arith.subf %13, %16 : vector<256x256xf32>
    %18 = math.exp %17 : vector<256x256xf32>
    %cst_11 = arith.constant dense<0.000000e+00> : vector<256xf32>
    %19 = vector.multi_reduction <add>, %18, %cst_11 [1] : vector<256x256xf32> to vector<256xf32>
    %20 = vector.shape_cast %19 : vector<256xf32> to vector<256x1xf32>
    %cst_12 = arith.constant 1.000000e+00 : f32
    %21 = vector.broadcast %cst_12 : f32 to vector<256x1xf32>
    %22 = arith.divf %21, %20 : vector<256x1xf32>
    %23 = vector.broadcast %22 : vector<256x1xf32> to vector<256x256xf32>
    %24 = arith.mulf %18, %23 : vector<256x256xf32>
    %25 = vector.shape_cast %24 : vector<256x256xf32> to vector<1x1x256x256xf32>
    %c0_13 = arith.constant 0 : index
    %c0_14 = arith.constant 0 : index
    %c0_15 = arith.constant 0 : index
    %c0_16 = arith.constant 0 : index
    %26 = vector.load %arg7[%c0_13, %c0_14, %c0_15, %c0_16] : memref<1x1x256x256xf32, #tpu.memory_space<vmem>>, vector<1x1x256x256xf32>
    tpu.vector_store %arg7[%c0_13, %c0_14, %c0_15, %c0_16], %25 {strides = array<i32>} : memref<1x1x256x256xf32, #tpu.memory_space<vmem>>, vector<1x1x256x256xf32>,
    return
  }
  func.func @transform_0(%arg0: i32, %arg1: i32, %arg2: i32) -> (i32, i32, i32) {
    %c0_i32 = arith.constant 0 : i32
    %c0_i32_0 = arith.constant 0 : i32
    return %arg0, %c0_i32, %arg2 : i32, i32, i32
  }
  func.func @transform_1(%arg0: i32, %arg1: i32, %arg2: i32) -> (i32, i32, i32) {
    %c0_i32 = arith.constant 0 : i32
    %c0_i32_0 = arith.constant 0 : i32
    %c0_i32_1 = arith.constant 0 : i32
    return %arg0, %c0_i32, %c0_i32_0 : i32, i32, i32
  }
  func.func @transform_2(%arg0: i32, %arg1: i32, %arg2: i32) -> (i32, i32, i32) {
    %c0_i32 = arith.constant 0 : i32
    %c0_i32_0 = arith.constant 0 : i32
    %c0_i32_1 = arith.constant 0 : i32
    return %arg1, %c0_i32, %c0_i32_0 : i32, i32, i32
  }
  func.func @transform_3(%arg0: i32, %arg1: i32, %arg2: i32) -> (i32, i32, i32) {
    %c0_i32 = arith.constant 0 : i32
    %c0_i32_0 = arith.constant 0 : i32
    %c0_i32_1 = arith.constant 0 : i32
    return %arg1, %c0_i32, %c0_i32_0 : i32, i32, i32
  }
  func.func @transform_4(%arg0: i32, %arg1: i32, %arg2: i32) -> (i32, i32, i32, i32) {
    %c0_i32 = arith.constant 0 : i32
    %c0_i32_0 = arith.constant 0 : i32
    return %arg0, %arg1, %arg2, %c0_i32 : i32, i32, i32, i32
  }
}

</mosaic_0001>

<bundles_post_ra>
// kernel: tpu_custom_call.1
= control target key start
LH: loop header
LB: loop body
LE: loop exit
PB: predicated region body
PF: predicated region fallthrough
CT: control target
= control target key end

     0   :  { %s4425_s0 = inlined_call_operand.hbm [shape: f32[2,128,256], index: 0, kind: input, shape index: {}]   ;;  %s4426_s1 = inlined_call_operand.hbm [shape: f32[2,128,256], index: 1, kind: input, shape index: {}]   ;;  %s4427_s2 = inlined_call_operand.hbm [shape: bf16[4,128,128], index: 2, kind: input, shape index: {}]   ;;  %s4428_s3 = inlined_call_operand.hbm [shape: bf16[4,128,128], index: 3, kind: input, shape index: {}]   ;;  %s4429_s4 = inlined_call_operand.hbm [shape: f32[2,4,256,256], index: 4, kind: output, shape index: {}]  }
   0x1   :  { %4469 = sst [smem:[#allocation52_spill]] %s4425_s0 }
   0x2   :  { %4470 = sst [smem:[#allocation53_spill]] %s4426_s1 }
   0x3   :  { %4471 = sst [smem:[#allocation54_spill]] %s4427_s2 }
   0x4   :  { %4472 = sst [smem:[#allocation55_spill]] %s4429_s4 }
   0x5   :  { %9 = vsyncpa [#allocation4], 0 }
   0x6   :  { %11 = vsyncpa [#allocation4 + $0x1], 0 }
   0x7   :  { %12 = vsyncpa [#allocation7], 0 }
   0x8   :  { %14 = vsyncpa [#allocation7 + $0x1], 0 }
   0x9   :  { %15 = vsyncpa [#allocation10], 0 }
   0xa   :  { %17 = vsyncpa [#allocation10 + $0x1], 0 }
   0xb   :  { %18 = vsyncpa [#allocation5], 0 }
   0xc   :  { %20 = vsyncpa [#allocation5 + $0x1], 0  ;;  %s3220_s15 = smov 0   ;;  %s3222_s16 = smov 0  }
   0xd   :  { %s3224_s17 = smov 0   ;;  %s3226_s18 = smov 0  }
   0xe   :  { %s3228_s19 = smov 0   ;;  %s3230_s20 = smov 0  }
   0xf   :  { %s3232_s21 = smov 0   ;;  %s3234_s22 = smov 0  }
  0x10   :  { %s3236_s23 = smov 0   ;;  %s3238_s24 = smov 0  }
  0x11   :  { %s3240_s25 = smov 0   ;;  %s3242_s26 = smov 0  }
  0x12   :  { %s3244_s27 = smov 0   ;;  %s3246_s28 = smov 0  }
  0x13 LB: > { %4473 = sst [smem:[#allocation17_spill]] %s3155_s20  ;;  %s3289_s29 = sadd.s32 4294967295, %s3187_s28   ;;  %s3187_s28 = sphi %s3246_s28, %s26_s28   ;;  %s3183_s27 = sphi %s3244_s27, %s4587_s27   ;;  %s3179_s26 = sphi %s3242_s26, %s4586_s26   ;;  %s3175_s25 = sphi %s3240_s25, %s4585_s25   ;;  %s3171_s24 = sphi %s3238_s24, %s4584_s24   ;;  %s3167_s23 = sphi %s3236_s23, %s4583_s23   ;;  %s3163_s22 = sphi %s3234_s22, %s4582_s22   ;;  %s3159_s21 = sphi %s3232_s21, %s4581_s21   ;;  %s3155_s20 = sphi %s3230_s20, %s4580_s20   ;;  %s3151_s19 = sphi %s3228_s19, %s4592_s19   ;;  %s3147_s18 = sphi %s3226_s18, %s4591_s18   ;;  %s3143_s17 = sphi %s3224_s17, %s4590_s17   ;;  %s3139_s16 = sphi %s3222_s16, %s4589_s16   ;;  %s3135_s15 = sphi %s3220_s15, %s4588_s15  }
  0x14   : > { %4474 = sst [smem:[#allocation18_spill]] %s3163_s22  ;;  %p61_p0 = scmp.ne.s32.totalorder %s3167_s23, %s3163_s22 }
  0x15   : > { %4475 = sst [smem:[#allocation19_spill]] %s3167_s23  ;;  %p62_p1 = scmp.eq.s32.totalorder %s3187_s28, 0 }
  0x16   : > { %4476 = sst [smem:[#allocation20_spill]] %s3171_s24  ;;  %p67_p2 = scmp.ne.s32.totalorder %s3163_s22, %s3159_s21 }
  0x17   : > { %4477 = sst [smem:[#allocation21_spill]] %s3175_s25  ;;  %p68_p3 = scmp.eq.s32.totalorder %s3289_s29, 0 }
  0x18   : > { %4478 = sst [smem:[#allocation22_spill]] %s3179_s26  ;;  %p173_p4 = scmp.eq.s32.totalorder %s3289_s29, 7 }
  0x19   : > { %4479 = sst [smem:[#allocation23_spill]] %s3183_s27  ;;  %p63_p5 = por %p62_p1, %p61_p0 }
  0x1a   : > { %p3303_p6 = por %p68_p3, %p67_p2  ;;  %p2597_p7 = scmp.lt.s32.totalorder %s3187_s28, 8 }
  0x1b   : > { %s199_s7 = sand.u32 1, %s3167_s23   ;;  %s2534_s8 = sshll.u32 %s3183_s27, 8 }
  0x1c   : > { %s4480_s6 = scalar_select %p3303_p6, 1, 0 }
  0x1d   : > { %s2382_s9 = sshll.u32 %s199_s7, 8  ;;  %p3312_p8 = pnand %p2597_p7, %p63_p5 }
  0x1e   : > { %4481 = sst [smem:[#allocation24_spill]] %s4480_s6  ;;  %s223_s11 = sand.u32 1, %s3187_s28  }
  0x1f   : > { %s4483_s1 = sld [smem:[#allocation53_spill]]  ;;  %s227_s21 = scalar_lea.vmem [#allocation6], %s2382_s9 }
  0x20   : > { %s235_s5 = sshll.u32 %s227_s21, 4  ;;  %p2394_p9 = scmp.ge.s32.totalorder %s3187_s28, 1  ;;  %s236_s5 = int_to_ptr.vmem [resolvable:$true] %s235_s5 }
  0x21   : > { %s3321_s4 = scalar_lea.sflag [#allocation7], %s223_s11  ;;  %s3189_s25 = smov 256  }
  0x22   : > { %s3190_s24 = smov 16   ;;  %p287_p10 = scmp.lt.s32.totalorder %s3187_s28, 9 }
  0x23   : > { %s4485_s0 = sld [smem:[#allocation52_spill]]  ;;  %s203_s21 = scalar_lea.vmem [#allocation3], %s2382_s9 }
  0x24   : > { %p3327_p11 = pnand %p2394_p9, %p287_p10  ;;  %s41_s22 = sadd.s32 1, %s3179_s26 }
  0x25   : > { %s232_s14 = scalar_lea.hbm %s4483_s1, %s2534_s8  ;;  %s213_s1 = sshll.u32 %s203_s21, 4  ;;  %s214_s1 = int_to_ptr.vmem [resolvable:$true] %s213_s1 }
  0x26   : > { %s233_s30 = sshll.u32 %s232_s14, 4  ;;  %p43_p12 = scmp.ge.s32.totalorder %s41_s22, 4  ;;  %s234_s30 = int_to_ptr.hbm [resolvable:$true] %s233_s30 }
  0x27   : > { %2586 = dma.hbm_to_vmem [thread:$0]  (!%p3312_p8), %s234_s30, 4096, %s236_s5, %s3321_s4, %s3189_s25, %s3189_s25, %s3190_s24  }
  0x28   : > { %s200_s30 = scalar_lea.sflag [#allocation4], %s199_s7  ;;  %s2379_s5 = sadd.s32 4294967294, %s3187_s28  }
  0x29   : > { %s210_s11 = scalar_lea.hbm %s4485_s0, %s2534_s8  ;;  %s106_s8 = sadd.s32 1, %s3155_s20 }
  0x2a   : > { %s211_s6 = sshll.u32 %s210_s11, 4  ;;  %p113_p13 = scmp.ne.s32.totalorder %s3155_s20, %s3151_s19  ;;  %s212_s6 = int_to_ptr.hbm [resolvable:$true] %s211_s6 }
  0x2b   : > { %2583 = dma.hbm_to_vmem [thread:$0]  (!%p3312_p8), %s212_s6, 4096, %s214_s1, %s200_s30, %s3189_s25, %s3189_s25, %s3190_s24  }
  0x2c   : > { %p119_p0 = scmp.ne.s32.totalorder %s3151_s19, %s3147_s18  ;;  %s162_s9 = sadd.s32 1, %s3143_s17 }
  0x2d   : > { %s4594_s22 = smov (%p43_p12, %s41_s22), 0  ;;  %s4487_s13 = sadd.s32 1, %s3183_s27 }
  0x2e   : > { %4486 = sst [smem:[#allocation25_spill]] %s4594_s22  ;;  %s4596_s13 = smov (!%p43_p12, %s4487_s13), %s3183_s27 }
  0x2f   : > { %s103_s1 = ssub.s32 %s3179_s26, %s4594_s22  ;;  %p3353_p2 = por %p113_p13, %p62_p1 }
  0x30   : > { %p47_p5 = scmp.ge.s32.totalorder %s4596_s13, 2  ;;  %p104_p8 = scmp.eq.s32.totalorder %s103_s1, 0 }
  0x31   : > { %p3359_p9 = por %p119_p0, %p68_p3  ;;  %p172_p10 = scmp.ne.s32.totalorder %s3143_s17, %s3139_s16 }
  0x32   : > { %s4598_s13 = smov (%p47_p5, %s4596_s13), 0  ;;  %p178_p13 = scmp.ne.s32.totalorder %s3139_s16, %s3135_s15 }
  0x33   : > { %4490 = sst [smem:[#allocation26_spill]] %s4598_s13  ;;  %s49_s6 = ssub.s32 %s3183_s27, %s4598_s13 }
  0x34   : > { %s3368_s25 = scalar_select %p104_p8, %s3155_s20, %s106_s8  }
  0x35   : > { %p3374_p1 = por %p173_p4, %p172_p10  ;;  %p52_p12 = scmp.eq.s32.totalorder %s49_s6, 0 }
  0x36   : > { %4491 = sst [smem:[#allocation27_spill]] %s3368_s25  ;;  %s157_s10 = sor.u32 %s103_s1, %s49_s6 }
  0x37   : > { %p160_p3 = scmp.eq.s32.totalorder %s157_s10, 0  ;;  %s4493_s14 = sadd.s32 1, %s3167_s23 }
  0x38   : > { %s3383_s11 = scalar_select %p52_p12, %s3167_s23, %s4493_s14  }
  0x39   : > { %s3386_s21 = scalar_select %p160_p3, %s3143_s17, %s162_s9  }
  0x3a   : > { %4494 = sst [smem:[#allocation28_spill]] %s3383_s11  ;;  %p179_p0 = scmp.eq.s32.totalorder %s2379_s5, 7 }
  0x3b   : > { %4495 = sst [smem:[#allocation29_spill]] %s3386_s21  ;;  %s247_s30 = sand.u32 1, %s3155_s20  }
  0x3c   : > { %s2388_s8 = sshll.u32 %s247_s30, 6  ;;  %s2536_s0 = sshll.u32 %s3179_s26, 6 }
  0x3d   : > { %p3390_p4 = por %p179_p0, %p178_p13  ;;  %s4497_s2 = sld [smem:[#allocation54_spill]] }
  0x3e   : > { %s249_s10 = scalar_lea.vmem [#allocation8], %s2388_s8  ;;  %p2587_p5 = pnand %p2597_p7, %p3353_p2 }
  0x3f   : > { %s257_s27 = sshll.u32 %s249_s10, 4  ;;  %s3191_s5 = smov 64   ;;  %s258_s27 = int_to_ptr.vmem [resolvable:$true] %s257_s27 }
  0x40   : > { %s3192_s9 = smov 4   ;;  %s276_s11 = scalar_lea.hbm %s4428_s3, %s2536_s0 }
  0x41   : > { %s277_s23 = sshll.u32 %s276_s11, 4  ;;  %s271_s20 = scalar_lea.vmem [#allocation9], %s2388_s8  ;;  %s278_s23 = int_to_ptr.hbm [resolvable:$true] %s277_s23 }
  0x42   : > { %s279_s21 = sshll.u32 %s271_s20, 4  ;;  %s268_s22 = scalar_lea.sflag [#allocation10], %s247_s30  ;;  %s280_s21 = int_to_ptr.vmem [resolvable:$true] %s279_s21 }
  0x43   : > { %s254_s6 = scalar_lea.hbm %s4497_s2, %s2536_s0  ;;  %291 = sbr.rel (%p3327_p11) target bundleno = 1262 (0x4ee), region = 36 }
  0x44   : > { %s255_s25 = sshll.u32 %s254_s6, 4  ;;  %s256_s25 = int_to_ptr.hbm [resolvable:$true] %s255_s25 }
  0x45   : > { %2589 = dma.hbm_to_vmem [thread:$0]  (!%p2587_p5), %s256_s25, 1024, %s258_s27, %s3321_s4, %s3191_s5, %s3191_s5, %s3192_s9  }
  0x46   : > { %2592 = dma.hbm_to_vmem [thread:$0]  (!%p2587_p5), %s278_s23, 1024, %s280_s21, %s268_s22, %s3191_s5, %s3191_s5, %s3192_s9  }
  0x48   : > { %s4498_s24 = sld [smem:[#allocation18_spill]] }
  0x4e   : > { %s293_s6 = sand.u32 1, %s4498_s24  }
  0x4f   : > { %s2395_s10 = sshll.u32 %s293_s6, 8  ;;  %s294_s2 = scalar_lea.sflag [#allocation4], %s293_s6 }
  0x50   : > { %s3408_s4 = scalar_lea.vmem [#allocation3], %s2395_s10 }
  0x51   : > { %3114 = dma.done.wait (%p3303_p6), %s294_s2, 4096  }
  0x52   : > { %3116 = vsyncadd (%p3303_p6), %s294_s2, 4294963200  ;;  %s303_s0 = sand.u32 1, %s3289_s29   ;;  %s3415_s23 = scalar_lea.vmem [#allocation6], %s2395_s10 }
  0x53   : > { %s304_s20 = scalar_lea.sflag [#allocation7], %s303_s0 }
  0x54   : > { %3118 = dma.done.wait (%p3303_p6), %s304_s20, 4096  }
  0x55   : > { %3120 = vsyncadd (%p3303_p6), %s304_s20, 4294963200  ;;  %s315_s26 = sand.u32 1, %s3151_s19  }
  0x56   : > { %s2397_s27 = sshll.u32 %s315_s26, 6 }
  0x57   : > { %s3422_s12 = scalar_lea.vmem [#allocation8], %s2397_s27 }
  0x58   : > { %3122 = dma.done.wait (%p3359_p9), %s304_s20, 1024  }
  0x59   : > { %3124 = vsyncadd (%p3359_p9), %s304_s20, 4294966272  ;;  %s324_s2 = scalar_lea.sflag [#allocation10], %s315_s26  ;;  %s3428_s29 = scalar_lea.vmem [#allocation9], %s2397_s27 }
  0x5a   : > { %3126 = dma.done.wait (%p3359_p9), %s324_s2, 1024  }
  0x5b   : > { %3128 = vsyncadd (%p3359_p9), %s324_s2, 4294966272  ;;  %v402_v0 = vld [vmem:[%s3415_s23 + $0xe0] sm:$0xff]  ;;  %v404_v1 = vld [vmem:[%s3415_s23 + $0xf0] sm:$0xff]  ;;  %s365_s18 = sand.u32 1, %s3139_s16   ;;  %s4572_s21 = sld [smem:[#allocation20_spill]] }
  0x5c   : > { %v403_v2 = vld [vmem:[%s3415_s23 + $0xe8] sm:$0xff]  ;;  %v420_v3 = vpack.c.bf16 %v404_v1, %v402_v0  ;;  %v405_v4 = vld [vmem:[%s3415_s23 + $0xf8] sm:$0xff]  ;;  %v398_v5 = vld [vmem:[%s3415_s23 + $0xc0] sm:$0xff]  ;;  %s2399_s25 = sshll.u32 %s365_s18, 9  ;;  %s4573_s30 = sld [smem:[#allocation21_spill]] }
  0x5d   : > { %v400_v6 = vld [vmem:[%s3415_s23 + $0xd0] sm:$0xff]  ;;  %v421_v7 = vpack.c.bf16 %v405_v4, %v403_v2  ;;  %v399_v8 = vld [vmem:[%s3415_s23 + $0xc8] sm:$0xff]  ;;  %v401_v9 = vld [vmem:[%s3415_s23 + $0xd8] sm:$0xff]  ;;  %s3976_s11 = scalar_lea.vmem [#allocation11], %s2399_s25  ;;  %s4576_s1 = sld [smem:[#allocation55_spill]] }
  0x5e   : > { %486 = vmatpush.bf16.msra.mxu2 %v420_v3  ;;  %v418_v10 = vpack.c.bf16 %v400_v6, %v398_v5  ;;  %v419_v11 = vpack.c.bf16 %v401_v9, %v399_v8  ;;  %v394_v12 = vld [vmem:[%s3415_s23 + $0xa0] sm:$0xff]  ;;  %v396_v13 = vld [vmem:[%s3415_s23 + $0xb0] sm:$0xff]  ;;  %v395_v14 = vld [vmem:[%s3415_s23 + $0xa8] sm:$0xff]  ;;  %s2214_s10 = sshll.u32 %s3976_s11, 4  ;;  %s2197_s0 = scalar_lea.sflag [#allocation5], %s365_s18  ;;  %s2215_s10 = int_to_ptr.vmem [resolvable:$true] %s2214_s10 }
  0x5f   : > { %535 = vmatpush.bf16.msra.mxu3 %v421_v7  ;;  %v397_v15 = vld [vmem:[%s3415_s23 + $0xb8] sm:$0xff]  ;;  %v416_v16 = vpack.c.bf16 %v396_v13, %v394_v12  ;;  %v390_v18 = vld [vmem:[%s3415_s23 + $0x80] sm:$0xff]  ;;  %v392_v19 = vld [vmem:[%s3415_s23 + $0x90] sm:$0xff] }
  0x60   : > { %v417_v17 = vpack.c.bf16 %v397_v15, %v395_v14  ;;  %v391_v20 = vld [vmem:[%s3415_s23 + $0x88] sm:$0xff]  ;;  %v393_v21 = vld [vmem:[%s3415_s23 + $0x98] sm:$0xff]  ;;  %v414_v22 = vpack.c.bf16 %v392_v19, %v390_v18  ;;  %v386_v24 = vld [vmem:[%s3415_s23 + $0x60] sm:$0xff] }
  0x61   : > { %v415_v23 = vpack.c.bf16 %v393_v21, %v391_v20  ;;  %v388_v25 = vld [vmem:[%s3415_s23 + $0x70] sm:$0xff]  ;;  %v387_v26 = vld [vmem:[%s3415_s23 + $0x68] sm:$0xff]  ;;  %v389_v27 = vld [vmem:[%s3415_s23 + $0x78] sm:$0xff]  ;;  %s2529_s8 = sshll.u32 %s4572_s21, 6 }
  0x62   : > { %487 = vmatpush.bf16.msra.mxu2 %v418_v10  ;;  %v412_v28 = vpack.c.bf16 %v388_v25, %v386_v24  ;;  %v413_v29 = vpack.c.bf16 %v389_v27, %v387_v26  ;;  %v382_v30 = vld [vmem:[%s3415_s23 + $0x40] sm:$0xff]  ;;  %v384_v31 = vld [vmem:[%s3415_s23 + $0x50] sm:$0xff]  ;;  %v383_v32 = vld [vmem:[%s3415_s23 + $0x48] sm:$0xff]  ;;  %s2530_s5 = sshll.u32 %s4573_s30, 8 }
  0x63   : > { %536 = vmatpush.bf16.msra.mxu3 %v419_v11  ;;  %v385_v33 = vld [vmem:[%s3415_s23 + $0x58] sm:$0xff]  ;;  %v410_v34 = vpack.c.bf16 %v384_v31, %v382_v30  ;;  %v378_v36 = vld [vmem:[%s3415_s23 + $0x20] sm:$0xff]  ;;  %v380_v37 = vld [vmem:[%s3415_s23 + $0x30] sm:$0xff]  ;;  %s2211_s9 = sadd.s32 %s2530_s5, %s2529_s8 }
  0x64   : > { %v411_v35 = vpack.c.bf16 %v385_v33, %v383_v32  ;;  %v379_v38 = vld [vmem:[%s3415_s23 + $0x28] sm:$0xff]  ;;  %v381_v39 = vld [vmem:[%s3415_s23 + $0x38] sm:$0xff]  ;;  %v408_v40 = vpack.c.bf16 %v380_v37, %v378_v36  ;;  %v374_v42 = vld [vmem:[%s3415_s23] sm:$0xff]  ;;  %s2531_s14 = sshll.u32 %s2211_s9, 3 }
  0x65   : > { %v409_v41 = vpack.c.bf16 %v381_v39, %v379_v38  ;;  %v376_v43 = vld [vmem:[%s3415_s23 + $0x10] sm:$0xff]  ;;  %v375_v44 = vld [vmem:[%s3415_s23 + $0x8] sm:$0xff]  ;;  %v377_v45 = vld [vmem:[%s3415_s23 + $0x18] sm:$0xff]  ;;  %s2213_s6 = scalar_lea.hbm %s4576_s1, %s2531_s14 }
  0x66   : > { %488 = vmatpush.bf16.msra.mxu2 %v416_v16  ;;  %v644_v46 = vld [vmem:[%s3408_s4 + $0xe0] sm:$0xff]  ;;  %v646_v47 = vld [vmem:[%s3408_s4 + $0xf0] sm:$0xff]  ;;  %v645_v48 = vld [vmem:[%s3408_s4 + $0xe8] sm:$0xff]  ;;  %v406_v50 = vpack.c.bf16 %v376_v43, %v374_v42  ;;  %v407_v51 = vpack.c.bf16 %v377_v45, %v375_v44 }
  0x67   : > { %537 = vmatpush.bf16.msra.mxu3 %v417_v17  ;;  %v647_v49 = vld [vmem:[%s3408_s4 + $0xf8] sm:$0xff]  ;;  %v662_v52 = vpack.c.bf16 %v646_v47, %v644_v46  ;;  %v640_v54 = vld [vmem:[%s3408_s4 + $0xc0] sm:$0xff]  ;;  %v642_v55 = vld [vmem:[%s3408_s4 + $0xd0] sm:$0xff] }
  0x68   : > { %v663_v53 = vpack.c.bf16 %v647_v49, %v645_v48  ;;  %v2538_v56 = vld [vmem:[%s3428_s29] sm:$0xff]  ;;  %v641_v57 = vld [vmem:[%s3408_s4 + $0xc8] sm:$0xff]  ;;  %v643_v58 = vld [vmem:[%s3408_s4 + $0xd8] sm:$0xff]  ;;  %v660_v59 = vpack.c.bf16 %v642_v55, %v640_v54 }
  0x69   : > { %v661_v60 = vpack.c.bf16 %v643_v58, %v641_v57  ;;  %v636_v61 = vld [vmem:[%s3408_s4 + $0xa0] sm:$0xff]  ;;  %v638_v62 = vld [vmem:[%s3408_s4 + $0xb0] sm:$0xff]  ;;  %v637_v63 = vld [vmem:[%s3408_s4 + $0xa8] sm:$0xff] }
  0x6a   : > { %489 = vmatpush.bf16.msra.mxu2 %v414_v22  ;;  %v658_v0 = vpack.c.bf16 %v638_v62, %v636_v61  ;;  %v639_v1 = vld [vmem:[%s3408_s4 + $0xb8] sm:$0xff]  ;;  %v2539_v3 = vld [vmem:[%s3428_s29 + $0x8] sm:$0xff]  ;;  %v632_v4 = vld [vmem:[%s3408_s4 + $0x80] sm:$0xff] }
  0x6b   : > { %538 = vmatpush.bf16.msra.mxu3 %v415_v23  ;;  %v659_v2 = vpack.c.bf16 %v639_v1, %v637_v63  ;;  %v634_v5 = vld [vmem:[%s3408_s4 + $0x90] sm:$0xff]  ;;  %v633_v6 = vld [vmem:[%s3408_s4 + $0x88] sm:$0xff]  ;;  %v635_v8 = vld [vmem:[%s3408_s4 + $0x98] sm:$0xff] }
  0x6c   : > { %v656_v7 = vpack.c.bf16 %v634_v5, %v632_v4  ;;  %v657_v9 = vpack.c.bf16 %v635_v8, %v633_v6  ;;  %v2540_v10 = vld [vmem:[%s3428_s29 + $0x10] sm:$0xff]  ;;  %v628_v11 = vld [vmem:[%s3408_s4 + $0x60] sm:$0xff]  ;;  %v629_v13 = vld [vmem:[%s3408_s4 + $0x68] sm:$0xff] }
  0x6d   : > { %v630_v12 = vld [vmem:[%s3408_s4 + $0x70] sm:$0xff]  ;;  %v631_v15 = vld [vmem:[%s3408_s4 + $0x78] sm:$0xff]  ;;  %v624_v18 = vld [vmem:[%s3408_s4 + $0x40] sm:$0xff] }
  0x6e   : > { %490 = vmatpush.bf16.msra.mxu2 %v412_v28  ;;  %v654_v14 = vpack.c.bf16 %v630_v12, %v628_v11  ;;  %v655_v16 = vpack.c.bf16 %v631_v15, %v629_v13  ;;  %v2541_v17 = vld [vmem:[%s3428_s29 + $0x18] sm:$0xff]  ;;  %v626_v19 = vld [vmem:[%s3408_s4 + $0x50] sm:$0xff]  ;;  %v625_v20 = vld [vmem:[%s3408_s4 + $0x48] sm:$0xff] }
  0x6f   : > { %539 = vmatpush.bf16.msra.mxu3 %v413_v29  ;;  %v652_v21 = vpack.c.bf16 %v626_v19, %v624_v18  ;;  %v627_v22 = vld [vmem:[%s3408_s4 + $0x58] sm:$0xff]  ;;  %v2542_v24 = vld [vmem:[%s3428_s29 + $0x20] sm:$0xff]  ;;  %v622_v26 = vld [vmem:[%s3408_s4 + $0x30] sm:$0xff] }
  0x70   : > { %v653_v23 = vpack.c.bf16 %v627_v22, %v625_v20  ;;  %v620_v25 = vld [vmem:[%s3408_s4 + $0x20] sm:$0xff]  ;;  %v621_v27 = vld [vmem:[%s3408_s4 + $0x28] sm:$0xff]  ;;  %v623_v29 = vld [vmem:[%s3408_s4 + $0x38] sm:$0xff] }
  0x71   : > { %v650_v28 = vpack.c.bf16 %v622_v26, %v620_v25  ;;  %v651_v30 = vpack.c.bf16 %v623_v29, %v621_v27  ;;  %v2543_v31 = vld [vmem:[%s3428_s29 + $0x28] sm:$0xff]  ;;  %v616_v32 = vld [vmem:[%s3408_s4] sm:$0xff]  ;;  %v618_v33 = vld [vmem:[%s3408_s4 + $0x10] sm:$0xff] }
  0x72   : > { %491 = vmatpush.bf16.msra.mxu2 %v410_v34  ;;  %v617_v34 = vld [vmem:[%s3408_s4 + $0x8] sm:$0xff]  ;;  %v619_v36 = vld [vmem:[%s3408_s4 + $0x18] sm:$0xff]  ;;  %v2544_v38 = vld [vmem:[%s3428_s29 + $0x30] sm:$0xff]  ;;  %s2216_s4 = sshll.u32 %s2213_s6, 4  ;;  %s2217_s4 = int_to_ptr.hbm [resolvable:$true] %s2216_s4 }
  0x73   : > { %540 = vmatpush.bf16.msra.mxu3 %v411_v35  ;;  %v648_v35 = vpack.c.bf16 %v618_v33, %v616_v32  ;;  %v649_v37 = vpack.c.bf16 %v619_v36, %v617_v34  ;;  %v2545_v39 = vld [vmem:[%s3428_s29 + $0x38] sm:$0xff]  ;;  %v2547_v46 = vld [vmem:[%s3422_s12 + $0x8] sm:$0xff]  ;;  %s3043_s20 = sshra.s32 %s2217_s4, 4  ;;  %s3044_s20 = int_to_ptr.hbm [resolvable:$true] %s3043_s20 }
  0x74   : > { %s3045_s23 = scalar_lea.hbm %s3044_s20, 512  ;;  %p3050_p2 = scmp.lt.s32.totalorder %s3044_s20, %s4576_s1 }
  0x75   : > { %p3046_p6 = scmp.ne.s32.totalorder %s3044_s20, %s3045_s23 }
  0x76   : > { %492 = vmatpush.bf16.msra.mxu2 %v408_v40  ;;  %v2546_v40 = vld [vmem:[%s3422_s12] sm:$0xff] }
  0x77   : > { %541 = vmatpush.bf16.msra.mxu3 %v409_v41  ;;  %p3047_p7 = pnand %p3046_p6, %p3374_p1 }
  0x79   : > { %p3048_p11 = pneg %p3047_p7 }
  0x7a   : > { %493 = vmatpush.bf16.msra.mxu2 %v406_v50 }
  0x7b   : > { %542 = vmatpush.bf16.msra.mxu3 %v407_v51 }
  0x7d   : > { %494 = vmatmul.bf16.vlgmr.msra.gmra.mxu2 %v2538_v56 }
  0x7e   : > { %728 = vmatpush.bf16.msrb.mxu2 %v662_v52  ;;  %543 = vmatmul.bf16.vlgmr.msra.gmra.mxu3 %v2538_v56 }
  0x7f   : > { %777 = vmatpush.bf16.msrb.mxu3 %v663_v53  ;;  %v2548_v53 = vld [vmem:[%s3422_s12 + $0x10] sm:$0xff] }
  0x82   : > { %729 = vmatpush.bf16.msrb.mxu2 %v660_v59 }
  0x83   : > { %778 = vmatpush.bf16.msrb.mxu3 %v661_v60  ;;  %v2549_v60 = vld [vmem:[%s3422_s12 + $0x18] sm:$0xff] }
  0x86   : > { %730 = vmatpush.bf16.msrb.mxu2 %v658_v0 }
  0x87   : > { %779 = vmatpush.bf16.msrb.mxu3 %v659_v2 }
  0x8a   : > { %731 = vmatpush.bf16.msrb.mxu2 %v656_v7 }
  0x8b   : > { %780 = vmatpush.bf16.msrb.mxu3 %v657_v9 }
  0x8d   : > { %499 = vmatmul.bf16.gmra.mxu2 %v2539_v3 }
  0x8e   : > { %548 = vmatmul.bf16.gmra.mxu3 %v2539_v3  ;;  %732 = vmatpush.bf16.msrb.mxu2 %v654_v14  ;;  %v2550_v3 = vld [vmem:[%s3422_s12 + $0x20] sm:$0xff] }
  0x8f   : > { %781 = vmatpush.bf16.msrb.mxu3 %v655_v16 }
  0x92   : > { %733 = vmatpush.bf16.msrb.mxu2 %v652_v21 }
  0x93   : > { %782 = vmatpush.bf16.msrb.mxu3 %v653_v23 }
  0x96   : > { %734 = vmatpush.bf16.msrb.mxu2 %v650_v28 }
  0x97   : > { %783 = vmatpush.bf16.msrb.mxu3 %v651_v30 }
  0x9a   : > { %735 = vmatpush.bf16.msrb.mxu2 %v648_v35 }
  0x9b   : > { %784 = vmatpush.bf16.msrb.mxu3 %v649_v37 }
  0x9d   : > { %504 = vmatmul.bf16.gmra.mxu2 %v2540_v10 }
  0x9e   : > { %553 = vmatmul.bf16.gmra.mxu3 %v2540_v10  ;;  %v2551_v10 = vld [vmem:[%s3422_s12 + $0x28] sm:$0xff] }
  0xad   : > { %509 = vmatmul.bf16.gmra.mxu2 %v2541_v17 }
  0xae   : > { %558 = vmatmul.bf16.gmra.mxu3 %v2541_v17  ;;  %v2552_v17 = vld [vmem:[%s3422_s12 + $0x30] sm:$0xff] }
  0xbd   : > { %514 = vmatmul.bf16.gmra.mxu2 %v2542_v24 }
  0xbe   : > { %563 = vmatmul.bf16.gmra.mxu3 %v2542_v24  ;;  %v2553_v24 = vld [vmem:[%s3422_s12 + $0x38] sm:$0xff]  ;;  %s3049_s12 = scalar_lea.hbm %s4576_s1, 4096 }
  0xbf   : > { %p3051_p8 = scmp.lt.s32.totalorder %s3049_s12, %s3045_s23 }
  0xc1   : > { %p3052_p9 = por %p3051_p8, %p3050_p2 }
  0xc3   : > { %p3053_p10 = pnand %p3052_p9, %p3048_p11 }
  0xcd   : > { %519 = vmatmul.bf16.gmra.mxu2 %v2543_v31 }
  0xce   : > { %568 = vmatmul.bf16.gmra.mxu3 %v2543_v31 }
  0xdd   : > { %524 = vmatmul.bf16.gmra.mxu2 %v2544_v38 }
  0xde   : > { %573 = vmatmul.bf16.gmra.mxu3 %v2544_v38 }
  0xed   : > { %529 = vmatmul.bf16.gmra.mxu2 %v2545_v39 }
  0xee   : > { %578 = vmatmul.bf16.gmra.mxu3 %v2545_v39 }
  0xfd   : > { %736 = vmatmul.bf16.vlgmr.msrb.gmra.mxu2 %v2546_v40 }
  0xfe   : > { %785 = vmatmul.bf16.vlgmr.msrb.gmra.mxu3 %v2546_v40 }
 0x100   : > { %v495_v41 = vpop.f32.mrf.mxu2 }
 0x101   : > { %v544_v42 = vpop.f32.mrf.mxu3 }
 0x102   : > { %v584_v43 = vpack.c.bf16 %v544_v42, %v495_v41 }
 0x104   : > { %600 = vst [vmem:[#allocation2] sm:$0xff] %v584_v43 }
 0x108   : > { %v497_v44 = vpop.f32.mrf.mxu2 }
 0x109   : > { %v546_v45 = vpop.f32.mrf.mxu3 }
 0x10a   : > { %v585_v47 = vpack.c.bf16 %v546_v45, %v497_v44 }
 0x10c   : > { %601 = vst [vmem:[#allocation2 + $0x8] sm:$0xff] %v585_v47 }
 0x10d   : > { %741 = vmatmul.bf16.gmra.mxu2 %v2547_v46 }
 0x10e   : > { %790 = vmatmul.bf16.gmra.mxu3 %v2547_v46 }
 0x110   : > { %v500_v48 = vpop.f32.mrf.mxu2 }
 0x111   : > { %v549_v49 = vpop.f32.mrf.mxu3 }
 0x112   : > { %v586_v50 = vpack.c.bf16 %v549_v49, %v500_v48 }
 0x114   : > { %602 = vst [vmem:[#allocation2 + $0x10] sm:$0xff] %v586_v50 }
 0x118   : > { %v502_v51 = vpop.f32.mrf.mxu2 }
 0x119   : > { %v551_v52 = vpop.f32.mrf.mxu3 }
 0x11a   : > { %v587_v54 = vpack.c.bf16 %v551_v52, %v502_v51 }
 0x11c   : > { %603 = vst [vmem:[#allocation2 + $0x18] sm:$0xff] %v587_v54 }
 0x11d   : > { %746 = vmatmul.bf16.gmra.mxu2 %v2548_v53 }
 0x11e   : > { %795 = vmatmul.bf16.gmra.mxu3 %v2548_v53 }
 0x120   : > { %v505_v55 = vpop.f32.mrf.mxu2 }
 0x121   : > { %v554_v56 = vpop.f32.mrf.mxu3 }
 0x122   : > { %v588_v57 = vpack.c.bf16 %v554_v56, %v505_v55 }
 0x124   : > { %604 = vst [vmem:[#allocation2 + $0x20] sm:$0xff] %v588_v57 }
 0x128   : > { %v507_v58 = vpop.f32.mrf.mxu2 }
 0x129   : > { %v556_v59 = vpop.f32.mrf.mxu3 }
 0x12a   : > { %v589_v61 = vpack.c.bf16 %v556_v59, %v507_v58 }
 0x12c   : > { %605 = vst [vmem:[#allocation2 + $0x28] sm:$0xff] %v589_v61 }
 0x12d   : > { %751 = vmatmul.bf16.gmra.mxu2 %v2549_v60 }
 0x12e   : > { %800 = vmatmul.bf16.gmra.mxu3 %v2549_v60 }
 0x130   : > { %v510_v62 = vpop.f32.mrf.mxu2 }
 0x131   : > { %v559_v63 = vpop.f32.mrf.mxu3 }
 0x132   : > { %v590_v0 = vpack.c.bf16 %v559_v63, %v510_v62 }
 0x134   : > { %606 = vst [vmem:[#allocation2 + $0x30] sm:$0xff] %v590_v0 }
 0x138   : > { %v512_v1 = vpop.f32.mrf.mxu2 }
 0x139   : > { %v561_v2 = vpop.f32.mrf.mxu3 }
 0x13a   : > { %v591_v4 = vpack.c.bf16 %v561_v2, %v512_v1 }
 0x13b   : > { %v2490_v2 = vld [vmem:[#allocation2 + $0x30] sm:$0xf] }
 0x13c   : > { %607 = vst [vmem:[#allocation2 + $0x38] sm:$0xff] %v591_v4 }
 0x13d   : > { %756 = vmatmul.bf16.gmra.mxu2 %v2550_v3 }
 0x13e   : > { %805 = vmatmul.bf16.gmra.mxu3 %v2550_v3  ;;  %v2560_v3 = vld [vmem:[#allocation2 + $0x34] sm:$0xf] }
 0x140   : > { %v515_v5 = vpop.f32.mrf.mxu2 }
 0x141   : > { %v564_v6 = vpop.f32.mrf.mxu3 }
 0x142   : > { %v592_v7 = vpack.c.bf16 %v564_v6, %v515_v5  ;;  %v2559_v6 = vld [vmem:[#allocation2 + $0x24] sm:$0xf0] }
 0x143   : > { %v2561_v0 = vld [vmem:[#allocation2 + $0x34] sm:$0xf0]  ;;  %v2492_v1 = vld [vmem:[#allocation2 + $0x38] sm:$0xf0] }
 0x144   : > { %608 = vst [vmem:[#allocation2 + $0x40] sm:$0xff] %v592_v7  ;;  %v2491_v4 = vor.u32 %v2561_v0, %v2490_v2  ;;  %v2495_v5 = vor.u32 %v2560_v3, %v2492_v1  ;;  %v2484_v7 = vld [vmem:[#allocation2 + $0x28] sm:$0xf0] }
 0x148   : > { %v517_v8 = vpop.f32.mrf.mxu2 }
 0x149   : > { %v566_v9 = vpop.f32.mrf.mxu3 }
 0x14a   : > { %v593_v11 = vpack.c.bf16 %v566_v9, %v517_v8  ;;  %v2482_v8 = vld [vmem:[#allocation2 + $0x20] sm:$0xf]  ;;  %v2558_v9 = vld [vmem:[#allocation2 + $0x24] sm:$0xf] }
 0x14b   : > { %v2498_v58 = vld [vmem:[#allocation2 + $0x40] sm:$0xf]  ;;  %v2562_v59 = vld [vmem:[#allocation2 + $0x44] sm:$0xf] }
 0x14c   : > { %609 = vst [vmem:[#allocation2 + $0x48] sm:$0xff] %v593_v11  ;;  %v2483_v11 = vor.u32 %v2559_v6, %v2482_v8 }
 0x14d   : > { %761 = vmatmul.bf16.gmra.mxu2 %v2551_v10 }
 0x14e   : > { %810 = vmatmul.bf16.gmra.mxu3 %v2551_v10 }
 0x150   : > { %v520_v12 = vpop.f32.mrf.mxu2 }
 0x151   : > { %v569_v13 = vpop.f32.mrf.mxu3 }
 0x152   : > { %v594_v14 = vpack.c.bf16 %v569_v13, %v520_v12  ;;  %v2487_v12 = vor.u32 %v2558_v9, %v2484_v7 }
 0x153   : > { %v2563_v56 = vld [vmem:[#allocation2 + $0x44] sm:$0xf0]  ;;  %v2500_v57 = vld [vmem:[#allocation2 + $0x48] sm:$0xf0] }
 0x154   : > { %610 = vst [vmem:[#allocation2 + $0x50] sm:$0xff] %v594_v14  ;;  %v2499_v61 = vor.u32 %v2563_v56, %v2498_v58  ;;  %v2503_v62 = vor.u32 %v2562_v59, %v2500_v57 }
 0x158   : > { %v522_v15 = vpop.f32.mrf.mxu2 }
 0x159   : > { %v571_v16 = vpop.f32.mrf.mxu3 }
 0x15a   : > { %v595_v18 = vpack.c.bf16 %v571_v16, %v522_v15  ;;  %v2557_v15 = vld [vmem:[#allocation2 + $0x14] sm:$0xf0]  ;;  %v2476_v16 = vld [vmem:[#allocation2 + $0x18] sm:$0xf0] }
 0x15b   : > { %v2506_v52 = vld [vmem:[#allocation2 + $0x50] sm:$0xf]  ;;  %v2564_v53 = vld [vmem:[#allocation2 + $0x54] sm:$0xf] }
 0x15c   : > { %611 = vst [vmem:[#allocation2 + $0x58] sm:$0xff] %v595_v18  ;;  %v2474_v18 = vld [vmem:[#allocation2 + $0x10] sm:$0xf] }
 0x15d   : > { %766 = vmatmul.bf16.gmra.mxu2 %v2552_v17 }
 0x15e   : > { %815 = vmatmul.bf16.gmra.mxu3 %v2552_v17 }
 0x160   : > { %v525_v19 = vpop.f32.mrf.mxu2 }
 0x161   : > { %v574_v20 = vpop.f32.mrf.mxu3 }
 0x162   : > { %v596_v21 = vpack.c.bf16 %v574_v20, %v525_v19  ;;  %v2556_v19 = vld [vmem:[#allocation2 + $0x14] sm:$0xf]  ;;  %v2475_v20 = vor.u32 %v2557_v15, %v2474_v18 }
 0x163   : > { %v2565_v49 = vld [vmem:[#allocation2 + $0x54] sm:$0xf0]  ;;  %v2508_v50 = vld [vmem:[#allocation2 + $0x58] sm:$0xf0] }
 0x164   : > { %612 = vst [vmem:[#allocation2 + $0x60] sm:$0xff] %v596_v21  ;;  %v2507_v54 = vor.u32 %v2565_v49, %v2506_v52  ;;  %v2511_v55 = vor.u32 %v2564_v53, %v2508_v50  ;;  %v2479_v21 = vor.u32 %v2556_v19, %v2476_v16 }
 0x168   : > { %v527_v22 = vpop.f32.mrf.mxu2 }
 0x169   : > { %v576_v23 = vpop.f32.mrf.mxu3 }
 0x16a   : > { %v597_v25 = vpack.c.bf16 %v576_v23, %v527_v22  ;;  %v2555_v22 = vld [vmem:[#allocation2 + $0x4] sm:$0xf0]  ;;  %v2468_v23 = vld [vmem:[#allocation2 + $0x8] sm:$0xf0] }
 0x16b   : > { %v2514_v42 = vld [vmem:[#allocation2 + $0x60] sm:$0xf]  ;;  %v2566_v43 = vld [vmem:[#allocation2 + $0x64] sm:$0xf] }
 0x16c   : > { %613 = vst [vmem:[#allocation2 + $0x68] sm:$0xff] %v597_v25  ;;  %v2554_v25 = vld [vmem:[#allocation2 + $0x4] sm:$0xf] }
 0x16d   : > { %771 = vmatmul.bf16.gmra.mxu2 %v2553_v24 }
 0x16e   : > { %820 = vmatmul.bf16.gmra.mxu3 %v2553_v24  ;;  %v2466_v24 = vld [vmem:[#allocation2] sm:$0xf] }
 0x170   : > { %v530_v26 = vpop.f32.mrf.mxu2 }
 0x171   : > { %v579_v27 = vpop.f32.mrf.mxu3 }
 0x172   : > { %v598_v28 = vpack.c.bf16 %v579_v27, %v530_v26  ;;  %v2467_v27 = vor.u32 %v2555_v22, %v2466_v24 }
 0x173   : > { %v2567_v40 = vld [vmem:[#allocation2 + $0x64] sm:$0xf0]  ;;  %v2516_v41 = vld [vmem:[#allocation2 + $0x68] sm:$0xf0] }
 0x174   : > { %614 = vst [vmem:[#allocation2 + $0x70] sm:$0xff] %v598_v28  ;;  %v2515_v45 = vor.u32 %v2567_v40, %v2514_v42  ;;  %v2519_v46 = vor.u32 %v2566_v43, %v2516_v41  ;;  %v2471_v28 = vor.u32 %v2554_v25, %v2468_v23 }
 0x178   : > { %v532_v29 = vpop.f32.mrf.mxu2 }
 0x179   : > { %v581_v30 = vpop.f32.mrf.mxu3 }
 0x17a   : > { %v599_v31 = vpack.c.bf16 %v581_v30, %v532_v29 }
 0x17b   : > { %v2522_v34 = vld [vmem:[#allocation2 + $0x70] sm:$0xf]  ;;  %v2568_v36 = vld [vmem:[#allocation2 + $0x74] sm:$0xf] }
 0x17c   : > { %615 = vst [vmem:[#allocation2 + $0x78] sm:$0xff] %v599_v31 }
 0x180   : > { %v737_v32 = vpop.f32.mrf.mxu2 }
 0x181   : > { %v786_v33 = vpop.f32.mrf.mxu3 }
 0x183   : > { %v2569_v35 = vld [vmem:[#allocation2 + $0x74] sm:$0xf0]  ;;  %v2524_v37 = vld [vmem:[#allocation2 + $0x78] sm:$0xf0] }
 0x184   : > { %v2523_v38 = vor.u32 %v2569_v35, %v2522_v34  ;;  %v2527_v39 = vor.u32 %v2568_v36, %v2524_v37 }
 0x186   : > { %962 = vmatpush.bf16.msra.mxu0 %v2523_v38  ;;  %1051 = vmatpush.bf16.msra.mxu1 %v2527_v39 }
 0x188   : > { %v739_v44 = vpop.f32.mrf.mxu2 }
 0x189   : > { %v826_v47 = vpack.c.bf16 %v739_v44, %v737_v32  ;;  %v788_v48 = vpop.f32.mrf.mxu3 }
 0x18a   : > { %v827_v51 = vpack.c.bf16 %v788_v48, %v786_v33  ;;  %963 = vmatpush.bf16.msra.mxu0 %v2515_v45  ;;  %1052 = vmatpush.bf16.msra.mxu1 %v2519_v46 }
 0x18c   : > { %858 = vxpose.binary.xlu0.c.b16.start [1/16] %v827_v51, %v826_v47, 128 }
 0x18e   : > { %964 = vmatpush.bf16.msra.mxu0 %v2507_v54  ;;  %1053 = vmatpush.bf16.msra.mxu1 %v2511_v55 }
 0x190   : > { %v742_v60 = vpop.f32.mrf.mxu2 }
 0x191   : > { %v791_v63 = vpop.f32.mrf.mxu3 }
 0x192   : > { %965 = vmatpush.bf16.msra.mxu0 %v2499_v61  ;;  %1054 = vmatpush.bf16.msra.mxu1 %v2503_v62 }
 0x196   : > { %966 = vmatpush.bf16.msra.mxu0 %v2491_v4  ;;  %1055 = vmatpush.bf16.msra.mxu1 %v2495_v5 }
 0x198   : > { %v744_v10 = vpop.f32.mrf.mxu2 }
 0x199   : > { %v828_v13 = vpack.c.bf16 %v744_v10, %v742_v60  ;;  %v793_v14 = vpop.f32.mrf.mxu3 }
 0x19a   : > { %v829_v17 = vpack.c.bf16 %v793_v14, %v791_v63  ;;  %967 = vmatpush.bf16.msra.mxu0 %v2483_v11  ;;  %1056 = vmatpush.bf16.msra.mxu1 %v2487_v12 }
 0x19c   : > { %859 = vxpose.binary.xlu0.c.b16.cont [2/16] %v829_v17, %v828_v13, 128 }
 0x19e   : > { %968 = vmatpush.bf16.msra.mxu0 %v2475_v20  ;;  %1057 = vmatpush.bf16.msra.mxu1 %v2479_v21 }
 0x1a0   : > { %v747_v26 = vpop.f32.mrf.mxu2 }
 0x1a1   : > { %v796_v29 = vpop.f32.mrf.mxu3 }
 0x1a2   : > { %969 = vmatpush.bf16.msra.mxu0 %v2467_v27  ;;  %1058 = vmatpush.bf16.msra.mxu1 %v2471_v28 }
 0x1a8   : > { %v749_v30 = vpop.f32.mrf.mxu2 }
 0x1a9   : > { %v830_v31 = vpack.c.bf16 %v749_v30, %v747_v26  ;;  %v798_v32 = vpop.f32.mrf.mxu3 }
 0x1aa   : > { %v831_v33 = vpack.c.bf16 %v798_v32, %v796_v29 }
 0x1ac   : > { %860 = vxpose.binary.xlu0.c.b16.cont [3/16] %v831_v33, %v830_v31, 128 }
 0x1b0   : > { %v752_v34 = vpop.f32.mrf.mxu2 }
 0x1b1   : > { %v801_v35 = vpop.f32.mrf.mxu3 }
 0x1b8   : > { %v754_v36 = vpop.f32.mrf.mxu2 }
 0x1b9   : > { %v832_v37 = vpack.c.bf16 %v754_v36, %v752_v34  ;;  %v803_v38 = vpop.f32.mrf.mxu3 }
 0x1ba   : > { %v833_v39 = vpack.c.bf16 %v803_v38, %v801_v35 }
 0x1bc   : > { %861 = vxpose.binary.xlu0.c.b16.cont [4/16] %v833_v39, %v832_v37, 128 }
 0x1c0   : > { %v757_v40 = vpop.f32.mrf.mxu2 }
 0x1c1   : > { %v806_v41 = vpop.f32.mrf.mxu3 }
 0x1c8   : > { %v759_v42 = vpop.f32.mrf.mxu2 }
 0x1c9   : > { %v834_v43 = vpack.c.bf16 %v759_v42, %v757_v40  ;;  %v808_v44 = vpop.f32.mrf.mxu3 }
 0x1ca   : > { %v835_v45 = vpack.c.bf16 %v808_v44, %v806_v41 }
 0x1cc   : > { %862 = vxpose.binary.xlu0.c.b16.cont [5/16] %v835_v45, %v834_v43, 128 }
 0x1d0   : > { %v762_v46 = vpop.f32.mrf.mxu2 }
 0x1d1   : > { %v811_v47 = vpop.f32.mrf.mxu3 }
 0x1d8   : > { %v764_v48 = vpop.f32.mrf.mxu2 }
 0x1d9   : > { %v836_v49 = vpack.c.bf16 %v764_v48, %v762_v46  ;;  %v813_v50 = vpop.f32.mrf.mxu3 }
 0x1da   : > { %v837_v51 = vpack.c.bf16 %v813_v50, %v811_v47 }
 0x1dc   : > { %863 = vxpose.binary.xlu0.c.b16.cont [6/16] %v837_v51, %v836_v49, 128 }
 0x1e0   : > { %v767_v52 = vpop.f32.mrf.mxu2 }
 0x1e1   : > { %v816_v53 = vpop.f32.mrf.mxu3 }
 0x1e8   : > { %v769_v54 = vpop.f32.mrf.mxu2 }
 0x1e9   : > { %v838_v55 = vpack.c.bf16 %v769_v54, %v767_v52  ;;  %v818_v56 = vpop.f32.mrf.mxu3 }
 0x1ea   : > { %v839_v57 = vpack.c.bf16 %v818_v56, %v816_v53 }
 0x1ec   : > { %864 = vxpose.binary.xlu0.c.b16.cont [7/16] %v839_v57, %v838_v55, 128 }
 0x1f0   : > { %v772_v58 = vpop.f32.mrf.mxu2 }
 0x1f1   : > { %v821_v59 = vpop.f32.mrf.mxu3 }
 0x1f8   : > { %v774_v60 = vpop.f32.mrf.mxu2 }
 0x1f9   : > { %v840_v61 = vpack.c.bf16 %v774_v60, %v772_v58  ;;  %v823_v62 = vpop.f32.mrf.mxu3 }
 0x1fa   : > { %v841_v63 = vpack.c.bf16 %v823_v62, %v821_v59 }
 0x1fc   : > { %865 = vxpose.binary.xlu0.c.b16.end [8/16] %v841_v63, %v840_v61, 128 }
 0x238   : > { %v866_v0 = vpop.trf.xlu0 }
 0x239   : > { %970 = vmatmul.bf16.vlgmr.msra.gmra.mxu0 %v866_v0  ;;  %1059 = vmatmul.bf16.vlgmr.msra.gmra.mxu1 %v866_v0 }
 0x240   : > { %v867_v1 = vpop.trf.xlu0 }
 0x248   : > { %v868_v2 = vpop.trf.xlu0 }
 0x249   : > { %975 = vmatmul.bf16.gmra.mxu0 %v868_v2  ;;  %1064 = vmatmul.bf16.gmra.mxu1 %v868_v2 }
 0x250   : > { %v869_v3 = vpop.trf.xlu0 }
 0x258   : > { %v870_v4 = vpop.trf.xlu0 }
 0x259   : > { %980 = vmatmul.bf16.gmra.mxu0 %v870_v4  ;;  %1069 = vmatmul.bf16.gmra.mxu1 %v870_v4 }
 0x260   : > { %v871_v5 = vpop.trf.xlu0 }
 0x268   : > { %v872_v6 = vpop.trf.xlu0 }
 0x269   : > { %985 = vmatmul.bf16.gmra.mxu0 %v872_v6  ;;  %1074 = vmatmul.bf16.gmra.mxu1 %v872_v6 }
 0x270   : > { %v873_v7 = vpop.trf.xlu0 }
 0x278   : > { %v874_v8 = vpop.trf.xlu0 }
 0x279   : > { %990 = vmatmul.bf16.gmra.mxu0 %v874_v8  ;;  %1079 = vmatmul.bf16.gmra.mxu1 %v874_v8 }
 0x280   : > { %v3514_v9 = vpop.trf.xlu0 }
 0x288   : > { %v876_v10 = vpop.trf.xlu0 }
 0x289   : > { %995 = vmatmul.bf16.gmra.mxu0 %v876_v10  ;;  %1084 = vmatmul.bf16.gmra.mxu1 %v876_v10 }
 0x290   : > { %v3516_v11 = vpop.trf.xlu0 }
 0x298   : > { %v878_v12 = vpop.trf.xlu0 }
 0x299   : > { %1000 = vmatmul.bf16.gmra.mxu0 %v878_v12  ;;  %1089 = vmatmul.bf16.gmra.mxu1 %v878_v12 }
 0x2a0   : > { %v3518_v13 = vpop.trf.xlu0 }
 0x2a8   : > { %v880_v14 = vpop.trf.xlu0 }
 0x2a9   : > { %1005 = vmatmul.bf16.gmra.mxu0 %v880_v14  ;;  %1094 = vmatmul.bf16.gmra.mxu1 %v880_v14 }
 0x2b6   : > { %v971_v15 = vpop.f32.mrf.mxu0  ;;  %v1060_v16 = vpop.f32.mrf.mxu1 }
 0x2b7   : > { %v3520_v17 = vmul.f32 0.088388346, %v971_v15  ;;  %v3522_v18 = vmul.f32 0.088388346, %v1060_v16 }
 0x2b9   : > { %1010 = vmatmul.bf16.gmra.mxu0 %v867_v1  ;;  %1099 = vmatmul.bf16.gmra.mxu1 %v867_v1  ;;  %v1204_v19 = vmax.f32 %v3520_v17, %v3522_v18 }
 0x2bb   : > { %1205 = vmax.xlane.f32.xlu1 %v1204_v19 }
 0x2be   : > { %v973_v20 = vpop.f32.mrf.mxu0  ;;  %v1062_v21 = vpop.f32.mrf.mxu1 }
 0x2bf   : > { %v3526_v22 = vmul.f32 0.088388346, %v973_v20  ;;  %v3528_v23 = vmul.f32 0.088388346, %v1062_v21 }
 0x2c1   : > { %v1207_v24 = vmax.f32 %v3526_v22, %v3528_v23 }
 0x2c3   : > { %1208 = vmax.xlane.f32.xlu1 %v1207_v24 }
 0x2c6   : > { %v976_v25 = vpop.f32.mrf.mxu0  ;;  %v1065_v26 = vpop.f32.mrf.mxu1 }
 0x2c7   : > { %v3532_v27 = vmul.f32 0.088388346, %v976_v25  ;;  %v3534_v28 = vmul.f32 0.088388346, %v1065_v26  ;;  %v881_v26 = vpop.trf.xlu0 }
 0x2c9   : > { %1015 = vmatmul.bf16.gmra.mxu0 %v869_v3  ;;  %1104 = vmatmul.bf16.gmra.mxu1 %v869_v3  ;;  %v1210_v29 = vmax.f32 %v3532_v27, %v3534_v28 }
 0x2cb   : > { %1211 = vmax.xlane.f32.xlu2 %v1210_v29 }
 0x2ce   : > { %v978_v30 = vpop.f32.mrf.mxu0  ;;  %v1067_v31 = vpop.f32.mrf.mxu1 }
 0x2cf   : > { %v3538_v32 = vmul.f32 0.088388346, %v978_v30  ;;  %v3540_v33 = vmul.f32 0.088388346, %v1067_v31 }
 0x2d1   : > { %v1213_v34 = vmax.f32 %v3538_v32, %v3540_v33 }
 0x2d3   : > { %1214 = vmax.xlane.f32.xlu2 %v1213_v34 }
 0x2d6   : > { %v981_v35 = vpop.f32.mrf.mxu0  ;;  %v1070_v36 = vpop.f32.mrf.mxu1 }
 0x2d7   : > { %v3544_v37 = vmul.f32 0.088388346, %v981_v35  ;;  %v3546_v38 = vmul.f32 0.088388346, %v1070_v36 }
 0x2d9   : > { %1020 = vmatmul.bf16.gmra.mxu0 %v871_v5  ;;  %1109 = vmatmul.bf16.gmra.mxu1 %v871_v5  ;;  %v1216_v39 = vmax.f32 %v3544_v37, %v3546_v38 }
 0x2db   : > { %1217 = vmax.xlane.f32.xlu1 %v1216_v39 }
 0x2de   : > { %v983_v40 = vpop.f32.mrf.mxu0  ;;  %v1072_v41 = vpop.f32.mrf.mxu1 }
 0x2df   : > { %v3550_v42 = vmul.f32 0.088388346, %v983_v40  ;;  %v3552_v43 = vmul.f32 0.088388346, %v1072_v41 }
 0x2e1   : > { %v1219_v44 = vmax.f32 %v3550_v42, %v3552_v43 }
 0x2e3   : > { %1220 = vmax.xlane.f32.xlu2 %v1219_v44 }
 0x2e6   : > { %v986_v45 = vpop.f32.mrf.mxu0  ;;  %v1075_v46 = vpop.f32.mrf.mxu1 }
 0x2e7   : > { %v3556_v47 = vmul.f32 0.088388346, %v986_v45  ;;  %v3558_v48 = vmul.f32 0.088388346, %v1075_v46 }
 0x2e9   : > { %1025 = vmatmul.bf16.gmra.mxu0 %v873_v7  ;;  %1114 = vmatmul.bf16.gmra.mxu1 %v873_v7  ;;  %v1222_v49 = vmax.f32 %v3556_v47, %v3558_v48 }
 0x2eb   : > { %1223 = vmax.xlane.f32.xlu1 %v1222_v49 }
 0x2ee   : > { %v988_v50 = vpop.f32.mrf.mxu0  ;;  %v1077_v51 = vpop.f32.mrf.mxu1 }
 0x2ef   : > { %v3562_v52 = vmul.f32 0.088388346, %v988_v50  ;;  %v3564_v53 = vmul.f32 0.088388346, %v1077_v51 }
 0x2f1   : > { %v1225_v54 = vmax.f32 %v3562_v52, %v3564_v53 }
 0x2f3   : > { %1226 = vmax.xlane.f32.xlu2 %v1225_v54 }
 0x2f6   : > { %v991_v55 = vpop.f32.mrf.mxu0  ;;  %v1080_v56 = vpop.f32.mrf.mxu1 }
 0x2f7   : > { %v3568_v57 = vmul.f32 0.088388346, %v991_v55  ;;  %v3570_v58 = vmul.f32 0.088388346, %v1080_v56 }
 0x2f9   : > { %1030 = vmatmul.bf16.gmra.mxu0 %v3514_v9  ;;  %1119 = vmatmul.bf16.gmra.mxu1 %v3514_v9  ;;  %v1228_v59 = vmax.f32 %v3568_v57, %v3570_v58 }
 0x2fb   : > { %1229 = vmax.xlane.f32.xlu1 %v1228_v59 }
 0x2fe   : > { %v993_v60 = vpop.f32.mrf.mxu0  ;;  %v1082_v61 = vpop.f32.mrf.mxu1 }
 0x2ff   : > { %v3576_v62 = vmul.f32 0.088388346, %v993_v60  ;;  %v3578_v63 = vmul.f32 0.088388346, %v1082_v61 }
 0x301   : > { %v1231_v0 = vmax.f32 %v3576_v62, %v3578_v63 }
 0x303   : > { %1232 = vmax.xlane.f32.xlu2 %v1231_v0 }
 0x306   : > { %v996_v1 = vpop.f32.mrf.mxu0  ;;  %v1085_v2 = vpop.f32.mrf.mxu1 }
 0x307   : > { %v3582_v3 = vmul.f32 0.088388346, %v996_v1  ;;  %v3584_v4 = vmul.f32 0.088388346, %v1085_v2 }
 0x309   : > { %1035 = vmatmul.bf16.gmra.mxu0 %v3516_v11  ;;  %1124 = vmatmul.bf16.gmra.mxu1 %v3516_v11  ;;  %v1234_v5 = vmax.f32 %v3582_v3, %v3584_v4 }
 0x30b   : > { %1235 = vmax.xlane.f32.xlu1 %v1234_v5 }
 0x30e   : > { %v998_v6 = vpop.f32.mrf.mxu0  ;;  %v1087_v7 = vpop.f32.mrf.mxu1 }
 0x30f   : > { %v3590_v8 = vmul.f32 0.088388346, %v998_v6  ;;  %v3592_v9 = vmul.f32 0.088388346, %v1087_v7 }
 0x311   : > { %v1237_v10 = vmax.f32 %v3590_v8, %v3592_v9 }
 0x313   : > { %1238 = vmax.xlane.f32.xlu2 %v1237_v10 }
 0x316   : > { %v1001_v12 = vpop.f32.mrf.mxu0  ;;  %v1090_v14 = vpop.f32.mrf.mxu1 }
 0x317   : > { %v3596_v15 = vmul.f32 0.088388346, %v1001_v12  ;;  %v3598_v16 = vmul.f32 0.088388346, %v1090_v14 }
 0x319   : > { %1040 = vmatmul.bf16.gmra.mxu0 %v3518_v13  ;;  %1129 = vmatmul.bf16.gmra.mxu1 %v3518_v13  ;;  %v1240_v11 = vmax.f32 %v3596_v15, %v3598_v16 }
 0x31b   : > { %1241 = vmax.xlane.f32.xlu1 %v1240_v11 }
 0x31e   : > { %v1003_v19 = vpop.f32.mrf.mxu0  ;;  %v1092_v20 = vpop.f32.mrf.mxu1 }
 0x31f   : > { %v3604_v21 = vmul.f32 0.088388346, %v1003_v19  ;;  %v3606_v24 = vmul.f32 0.088388346, %v1092_v20 }
 0x321   : > { %v1243_v25 = vmax.f32 %v3604_v21, %v3606_v24 }
 0x323   : > { %1244 = vmax.xlane.f32.xlu2 %v1243_v25 }
 0x326   : > { %v1006_v29 = vpop.f32.mrf.mxu0  ;;  %v1095_v30 = vpop.f32.mrf.mxu1 }
 0x327   : > { %v3610_v31 = vmul.f32 0.088388346, %v1006_v29  ;;  %v3612_v13 = vmul.f32 0.088388346, %v1095_v30 }
 0x329   : > { %1045 = vmatmul.bf16.gmra.mxu0 %v881_v26  ;;  %1134 = vmatmul.bf16.gmra.mxu1 %v881_v26  ;;  %v1246_v34 = vmax.f32 %v3610_v31, %v3612_v13 }
 0x32b   : > { %1247 = vmax.xlane.f32.xlu1 %v1246_v34 }
 0x32e   : > { %v1008_v35 = vpop.f32.mrf.mxu0  ;;  %v1097_v39 = vpop.f32.mrf.mxu1 }
 0x32f   : > { %v3616_v36 = vmul.f32 0.088388346, %v1008_v35  ;;  %v3618_v40 = vmul.f32 0.088388346, %v1097_v39 }
 0x331   : > { %v1249_v41 = vmax.f32 %v3616_v36, %v3618_v40 }
 0x333   : > { %1250 = vmax.xlane.f32.xlu2 %v1249_v41 }
 0x336   : > { %v1011_v44 = vpop.f32.mrf.mxu0  ;;  %v1100_v46 = vpop.f32.mrf.mxu1 }
 0x337   : > { %v3622_v45 = vmul.f32 0.088388346, %v1011_v44  ;;  %v3624_v49 = vmul.f32 0.088388346, %v1100_v46 }
 0x339   : > { %v1252_v50 = vmax.f32 %v3622_v45, %v3624_v49 }
 0x33b   : > { %1253 = vmax.xlane.f32.xlu1 %v1252_v50 }
 0x33e   : > { %v1013_v51 = vpop.f32.mrf.mxu0  ;;  %v1102_v55 = vpop.f32.mrf.mxu1 }
 0x33f   : > { %v3628_v54 = vmul.f32 0.088388346, %v1013_v51  ;;  %v3630_v56 = vmul.f32 0.088388346, %v1102_v55 }
 0x341   : > { %v1255_v59 = vmax.f32 %v3628_v54, %v3630_v56 }
 0x343   : > { %1256 = vmax.xlane.f32.xlu2 %v1255_v59 }
 0x346   : > { %v1016_v60 = vpop.f32.mrf.mxu0  ;;  %v1105_v0 = vpop.f32.mrf.mxu1 }
 0x347   : > { %v3634_v61 = vmul.f32 0.088388346, %v1016_v60  ;;  %v3636_v1 = vmul.f32 0.088388346, %v1105_v0 }
 0x349   : > { %v1258_v2 = vmax.f32 %v3634_v61, %v3636_v1 }
 0x34b   : > { %1259 = vmax.xlane.f32.xlu1 %v1258_v2 }
 0x34e   : > { %v1018_v5 = vpop.f32.mrf.mxu0  ;;  %v1107_v7 = vpop.f32.mrf.mxu1 }
 0x34f   : > { %v3640_v6 = vmul.f32 0.088388346, %v1018_v5  ;;  %v3642_v10 = vmul.f32 0.088388346, %v1107_v7 }
 0x351   : > { %v1261_v12 = vmax.f32 %v3640_v6, %v3642_v10 }
 0x353   : > { %1262 = vmax.xlane.f32.xlu2 %v1261_v12 }
 0x356   : > { %v1021_v14 = vpop.f32.mrf.mxu0  ;;  %v1110_v19 = vpop.f32.mrf.mxu1 }
 0x357   : > { %v3646_v11 = vmul.f32 0.088388346, %v1021_v14  ;;  %v3648_v20 = vmul.f32 0.088388346, %v1110_v19 }
 0x359   : > { %v1264_v25 = vmax.f32 %v3646_v11, %v3648_v20 }
 0x35b   : > { %1265 = vmax.xlane.f32.xlu1 %v1264_v25 }
 0x35e   : > { %v1023_v26 = vpop.f32.mrf.mxu0  ;;  %v1112_v30 = vpop.f32.mrf.mxu1 }
 0x35f   : > { %v3652_v29 = vmul.f32 0.088388346, %v1023_v26  ;;  %v3654_v34 = vmul.f32 0.088388346, %v1112_v30 }
 0x361   : > { %v1267_v35 = vmax.f32 %v3652_v29, %v3654_v34 }
 0x363   : > { %1268 = vmax.xlane.f32.xlu2 %v1267_v35 }
 0x366   : > { %v1026_v39 = vpop.f32.mrf.mxu0  ;;  %v1115_v44 = vpop.f32.mrf.mxu1 }
 0x367   : > { %v3658_v41 = vmul.f32 0.088388346, %v1026_v39  ;;  %v3660_v46 = vmul.f32 0.088388346, %v1115_v44  ;;  %v1206_v39 = vpop.xlane.xlu1 %1205 }
 0x369   : > { %v1270_v50 = vmax.f32 %v3658_v41, %v3660_v46 }
 0x36b   : > { %1271 = vmax.xlane.f32.xlu1 %v1270_v50 }
 0x36e   : > { %v1028_v51 = vpop.f32.mrf.mxu0  ;;  %v1117_v59 = vpop.f32.mrf.mxu1 }
 0x36f   : > { %v3664_v55 = vmul.f32 0.088388346, %v1028_v51  ;;  %v3666_v60 = vmul.f32 0.088388346, %v1117_v59 }
 0x371   : > { %4500 = vst [vmem:[#allocation30_spill] sm:$0xff] %v3666_v60  ;;  %v1273_v0 = vmax.f32 %v3664_v55, %v3666_v60 }
 0x373   : > { %1274 = vmax.xlane.f32.xlu2 %v1273_v0 }
 0x376   : > { %v1031_v2 = vpop.f32.mrf.mxu0  ;;  %v1120_v7 = vpop.f32.mrf.mxu1 }
 0x377   : > { %v3670_v5 = vmul.f32 0.088388346, %v1031_v2  ;;  %v3672_v12 = vmul.f32 0.088388346, %v1120_v7  ;;  %v1212_v2 = vpop.xlane.xlu2 %1211  ;;  %v1209_v7 = vpop.xlane.xlu1 %1208 }
 0x379   : > { %4501 = vst [vmem:[#allocation31_spill] sm:$0xff] %v3670_v5  ;;  %v1276_v14 = vmax.f32 %v3670_v5, %v3672_v12 }
 0x37a   : > { %4502 = vst [vmem:[#allocation32_spill] sm:$0xff] %v3672_v12 }
 0x37b   : > { %1277 = vmax.xlane.f32.xlu1 %v1276_v14 }
 0x37e   : > { %v1033_v19 = vpop.f32.mrf.mxu0  ;;  %v1122_v26 = vpop.f32.mrf.mxu1 }
 0x37f   : > { %v3676_v25 = vmul.f32 0.088388346, %v1033_v19  ;;  %v3678_v30 = vmul.f32 0.088388346, %v1122_v26 }
 0x381   : > { %4503 = vst [vmem:[#allocation33_spill] sm:$0xff] %v3676_v25  ;;  %v1279_v35 = vmax.f32 %v3676_v25, %v3678_v30 }
 0x382   : > { %4504 = vst [vmem:[#allocation34_spill] sm:$0xff] %v3678_v30  ;;  %v1302_v30 = vsub.f32 %v3526_v22, %v1209_v7 }
 0x383   : > { %1280 = vmax.xlane.f32.xlu2 %v1279_v35  ;;  %v1303_v35 = vsub.f32 %v3528_v23, %v1209_v7 }
 0x385   : > { %v1370_v12 = vmul.f32 1.442695, %v1303_v35 }
 0x386   : > { %v1036_v44 = vpop.f32.mrf.mxu0  ;;  %v1125_v51 = vpop.f32.mrf.mxu1 }
 0x387   : > { %v3682_v50 = vmul.f32 0.088388346, %v1036_v44  ;;  %v3684_v59 = vmul.f32 0.088388346, %v1125_v51  ;;  %v1368_v51 = vmul.f32 1.442695, %v1302_v30 }
 0x389   : > { %4505 = vst [vmem:[#allocation35_spill] sm:$0xff] %v3682_v50  ;;  %v1282_v0 = vmax.f32 %v3682_v50, %v3684_v59  ;;  %2717 = vpow2.f32 %v1368_v51 }
 0x38a   : > { %4506 = vst [vmem:[#allocation36_spill] sm:$0xff] %v3684_v59  ;;  %v1215_v59 = vpop.xlane.xlu2 %1214  ;;  %2719 = vpow2.f32 %v1370_v12 }
 0x38b   : > { %1283 = vmax.xlane.f32.xlu1 %v1282_v0  ;;  %v1300_v0 = vsub.f32 %v3520_v17, %v1206_v39  ;;  %v1306_v22 = vsub.f32 %v3538_v32, %v1215_v59  ;;  %v1307_v23 = vsub.f32 %v3540_v33, %v1215_v59  ;;  %v1305_v33 = vsub.f32 %v3534_v28, %v1212_v2  ;;  %v1218_v28 = vpop.xlane.xlu1 %1217 }
 0x38d   : > { %v1364_v30 = vmul.f32 1.442695, %v1300_v0  ;;  %v1376_v17 = vmul.f32 1.442695, %v1306_v22 }
 0x38e   : > { %v1038_v14 = vpop.f32.mrf.mxu0  ;;  %v1127_v26 = vpop.f32.mrf.mxu1 }
 0x38f   : > { %v3688_v19 = vmul.f32 0.088388346, %v1038_v14  ;;  %v3691_v25 = vmul.f32 0.088388346, %v1127_v26  ;;  %v1301_v14 = vsub.f32 %v3522_v18, %v1206_v39  ;;  %v3706_v39 = vpop.eup %2717  ;;  %2721 = vpow2.f32 %v1364_v30 }
 0x390   : > { %v1374_v30 = vmul.f32 1.442695, %v1305_v33 }
 0x391   : > { %v1285_v44 = vmax.f32 %v3688_v19, %v3691_v25  ;;  %v1366_v35 = vmul.f32 1.442695, %v1301_v14 }
 0x392   : > { %v1221_v18 = vpop.xlane.xlu2 %1220 }
 0x393   : > { %1286 = vmax.xlane.f32.xlu2 %v1285_v44  ;;  %v1378_v44 = vmul.f32 1.442695, %v1307_v23  ;;  %2723 = vpow2.f32 %v1366_v35  ;;  %v1310_v51 = vsub.f32 %v3550_v42, %v1221_v18  ;;  %v1311_v14 = vsub.f32 %v3552_v43, %v1221_v18 }
 0x394   : > { %2725 = vpow2.f32 %v1376_v17  ;;  %v1308_v43 = vsub.f32 %v3544_v37, %v1218_v28 }
 0x395   : > { %2727 = vpow2.f32 %v1378_v44  ;;  %v1386_v35 = vmul.f32 1.442695, %v1311_v14 }
 0x396   : > { %v1041_v50 = vpop.f32.mrf.mxu0  ;;  %v1130_v60 = vpop.f32.mrf.mxu1 }
 0x397   : > { %v3698_v5 = vmul.f32 0.088388346, %v1041_v50  ;;  %v3701_v26 = vmul.f32 0.088388346, %v1130_v60  ;;  %v1304_v50 = vsub.f32 %v3532_v27, %v1212_v2  ;;  %v3709_v60 = vpop.eup %2719 }
 0x398   : > { %v1495_v27 = vadd.f32 %v3709_v60, %v3706_v39  ;;  %v3722_v2 = vpop.eup %2721 }
 0x399   : > { %v1288_v7 = vmax.f32 %v3698_v5, %v3701_v26  ;;  %v1372_v22 = vmul.f32 1.442695, %v1304_v50  ;;  %v3724_v42 = vpop.eup %2723 }
 0x39a   : > { %4507 = vst [vmem:[#allocation37_spill] sm:$0xff] %v3724_v42  ;;  %v1227_v17 = vpop.xlane.xlu2 %1226  ;;  %v3726_v44 = vpop.eup %2725 }
 0x39b   : > { %1289 = vmax.xlane.f32.xlu1 %v1288_v7  ;;  %v1384_v7 = vmul.f32 1.442695, %v1310_v51  ;;  %2729 = vpow2.f32 %v1372_v22  ;;  %v3729_v50 = vpop.eup %2727  ;;  %v1314_v51 = vsub.f32 %v3562_v52, %v1227_v17  ;;  %v1315_v14 = vsub.f32 %v3564_v53, %v1227_v17 }
 0x39c   : > { %2731 = vpow2.f32 %v1374_v30  ;;  %v1380_v22 = vmul.f32 1.442695, %v1308_v43  ;;  %v1501_v37 = vadd.f32 %v3729_v50, %v3726_v44 }
 0x39d   : > { %2733 = vpow2.f32 %v1384_v7  ;;  %v1392_v52 = vmul.f32 1.442695, %v1314_v51  ;;  %v1394_v53 = vmul.f32 1.442695, %v1315_v14 }
 0x39e   : > { %v1043_v32 = vpop.f32.mrf.mxu0  ;;  %v1132_v59 = vpop.f32.mrf.mxu1  ;;  %2735 = vpow2.f32 %v1386_v35 }
 0x39f   : > { %v3712_v12 = vmul.f32 0.088388346, %v1043_v32  ;;  %v3715_v0 = vmul.f32 0.088388346, %v1132_v59  ;;  %v1309_v32 = vsub.f32 %v3546_v38, %v1218_v28  ;;  %v1224_v28 = vpop.xlane.xlu1 %1223  ;;  %2737 = vpow2.f32 %v1380_v22 }
 0x3a1   : > { %v1291_v23 = vmax.f32 %v3712_v12, %v3715_v0  ;;  %v1382_v30 = vmul.f32 1.442695, %v1309_v32  ;;  %v3744_v7 = vpop.eup %2729  ;;  %v1313_v32 = vsub.f32 %v3558_v48, %v1224_v28 }
 0x3a2   : > { %v3746_v35 = vpop.eup %2731  ;;  %v1233_v17 = vpop.xlane.xlu2 %1232 }
 0x3a3   : > { %1496 = vadd.xlane.f32.xlu1 %v1495_v27  ;;  %1292 = vmax.xlane.f32.xlu2 %v1291_v23  ;;  %v1492_v23 = vadd.f32 %v3724_v42, %v3722_v2  ;;  %v3748_v43 = vpop.eup %2733  ;;  %2739 = vpow2.f32 %v1382_v30  ;;  %v1318_v51 = vsub.f32 %v3576_v62, %v1233_v17  ;;  %v1498_v22 = vadd.f32 %v3746_v35, %v3744_v7 }
 0x3a4   : > { %2741 = vpow2.f32 %v1392_v52 }
 0x3a5   : > { %2743 = vpow2.f32 %v1394_v53  ;;  %v1400_v30 = vmul.f32 1.442695, %v1318_v51 }
 0x3a6   : > { %v1046_v18 = vpop.f32.mrf.mxu0  ;;  %v1135_v59 = vpop.f32.mrf.mxu1 }
 0x3a7   : > { %v3732_v33 = vmul.f32 0.088388346, %v1046_v18  ;;  %v3735_v27 = vmul.f32 0.088388346, %v1135_v59  ;;  %v1312_v18 = vsub.f32 %v3556_v47, %v1224_v28  ;;  %v3751_v59 = vpop.eup %2735  ;;  %v1230_v47 = vpop.xlane.xlu1 %1229 }
 0x3a8   : > { %v1507_v14 = vadd.f32 %v3751_v59, %v3748_v43  ;;  %v3760_v42 = vpop.eup %2737 }
 0x3a9   : > { %v1294_v38 = vmax.f32 %v3732_v33, %v3735_v27  ;;  %v3762_v48 = vpop.eup %2739 }
 0x3aa   : > { %v1239_v28 = vpop.xlane.xlu2 %1238  ;;  %v3764_v52 = vpop.eup %2741 }
 0x3ab   : > { %1502 = vadd.xlane.f32.xlu1 %v1501_v37  ;;  %1493 = vadd.xlane.f32.xlu2 %v1492_v23  ;;  %v1319_v37 = vsub.f32 %v3578_v63, %v1233_v17  ;;  %v1388_v23 = vmul.f32 1.442695, %v1312_v18  ;;  %v1316_v63 = vsub.f32 %v3568_v57, %v1230_v47  ;;  %v3767_v53 = vpop.eup %2743  ;;  %v1317_v17 = vsub.f32 %v3570_v58, %v1230_v47 }
 0x3ac   : > { %1295 = vmax.xlane.f32.xlu0 %v1294_v38  ;;  %v1390_v38 = vmul.f32 1.442695, %v1313_v32  ;;  %v1322_v18 = vsub.f32 %v3590_v8, %v1239_v28  ;;  %v1323_v32 = vsub.f32 %v3592_v9, %v1239_v28 }
 0x3ad   : > { %v1402_v62 = vmul.f32 1.442695, %v1319_v37  ;;  %2745 = vpow2.f32 %v1388_v23  ;;  %v1396_v51 = vmul.f32 1.442695, %v1316_v63  ;;  %v1513_v37 = vadd.f32 %v3767_v53, %v3764_v52 }
 0x3ae   : > { %2747 = vpow2.f32 %v1390_v38  ;;  %v1504_v23 = vadd.f32 %v3762_v48, %v3760_v42  ;;  %v1408_v38 = vmul.f32 1.442695, %v1322_v18  ;;  %v1410_v8 = vmul.f32 1.442695, %v1323_v32 }
 0x3af   : > { %2749 = vpow2.f32 %v1400_v30  ;;  %v1236_v57 = vpop.xlane.xlu1 %1235 }
 0x3b0   : > { %2751 = vpow2.f32 %v1402_v62  ;;  %v1320_v9 = vsub.f32 %v3582_v3, %v1236_v57  ;;  %v1321_v28 = vsub.f32 %v3584_v4, %v1236_v57 }
 0x3b1   : > { %2753 = vpow2.f32 %v1396_v51 }
 0x3b2   : > { %v1245_v47 = vpop.xlane.xlu2 %1244  ;;  %v1404_v18 = vmul.f32 1.442695, %v1320_v9 }
 0x3b3   : > { %1508 = vadd.xlane.f32.xlu1 %v1507_v14  ;;  %1499 = vadd.xlane.f32.xlu2 %v1498_v22  ;;  %v1398_v14 = vmul.f32 1.442695, %v1317_v17  ;;  %v3776_v22 = vpop.eup %2745  ;;  %v1326_v63 = vsub.f32 %v3604_v21, %v1245_v47  ;;  %v1327_v17 = vsub.f32 %v3606_v24, %v1245_v47 }
 0x3b4   : > { %v3778_v58 = vpop.eup %2747 }
 0x3b5   : > { %v3780_v30 = vpop.eup %2749  ;;  %2755 = vpow2.f32 %v1398_v14  ;;  %v1510_v51 = vadd.f32 %v3778_v58, %v3776_v22  ;;  %v1416_v14 = vmul.f32 1.442695, %v1326_v63  ;;  %v1418_v21 = vmul.f32 1.442695, %v1327_v17 }
 0x3b6   : > { %v3783_v62 = vpop.eup %2751  ;;  %2757 = vpow2.f32 %v1408_v38 }
 0x3b7   : > { %2759 = vpow2.f32 %v1410_v8  ;;  %v1519_v32 = vadd.f32 %v3783_v62, %v3780_v30  ;;  %v1242_v3 = vpop.xlane.xlu1 %1241 }
 0x3b8   : > { %2761 = vpow2.f32 %v1404_v18  ;;  %v1324_v38 = vsub.f32 %v3596_v15, %v1242_v3  ;;  %v1325_v8 = vsub.f32 %v3598_v16, %v1242_v3 }
 0x3ba   : > { %v1412_v17 = vmul.f32 1.442695, %v1324_v38  ;;  %v1251_v15 = vpop.xlane.xlu2 %1250 }
 0x3bb   : > { %1514 = vadd.xlane.f32.xlu1 %v1513_v37  ;;  %1505 = vadd.xlane.f32.xlu2 %v1504_v23  ;;  %v1406_v37 = vmul.f32 1.442695, %v1321_v28  ;;  %v3792_v23 = vpop.eup %2753 }
 0x3bc   : > { %4508 = vst [vmem:[#allocation38_spill] sm:$0xff] %v3792_v23  ;;  %v3794_v4 = vpop.eup %2755 }
 0x3bd   : > { %4509 = vst [vmem:[#allocation39_spill] sm:$0xff] %v3794_v4  ;;  %v3796_v57 = vpop.eup %2757  ;;  %2763 = vpow2.f32 %v1406_v37  ;;  %v1516_v9 = vadd.f32 %v3794_v4, %v3792_v23  ;;  %v1137_v23 = vpop.f32.mrf.mxu1 }
 0x3be   : > { %v3798_v24 = vpop.eup %2759  ;;  %2765 = vpow2.f32 %v1416_v14  ;;  %v1330_v14 = vsub.f32 %v3616_v36, %v1251_v15 }
 0x3bf   : > { %4510 = vst [vmem:[#allocation40_spill] sm:$0xff] %v3798_v24  ;;  %2767 = vpow2.f32 %v1418_v21  ;;  %v1525_v47 = vadd.f32 %v3798_v24, %v3796_v57  ;;  %v1248_v28 = vpop.xlane.xlu1 %1247  ;;  %v3806_v63 = vpop.eup %2761  ;;  %v1331_v21 = vsub.f32 %v3618_v40, %v1251_v15 }
 0x3c0   : > { %v1328_v16 = vsub.f32 %v3610_v31, %v1248_v28  ;;  %v1329_v3 = vsub.f32 %v3612_v13, %v1248_v28  ;;  %2769 = vpow2.f32 %v1412_v17  ;;  %v1424_v24 = vmul.f32 1.442695, %v1330_v14 }
 0x3c1   : > { %v1426_v13 = vmul.f32 1.442695, %v1331_v21 }
 0x3c2   : > { %v1420_v38 = vmul.f32 1.442695, %v1328_v16  ;;  %v1422_v4 = vmul.f32 1.442695, %v1329_v3  ;;  %v1257_v28 = vpop.xlane.xlu2 %1256 }
 0x3c3   : > { %1520 = vadd.xlane.f32.xlu1 %v1519_v32  ;;  %1511 = vadd.xlane.f32.xlu2 %v1510_v51  ;;  %v3808_v18 = vpop.eup %2763  ;;  %v1414_v32 = vmul.f32 1.442695, %v1325_v8  ;;  %v1334_v3 = vsub.f32 %v3628_v54, %v1257_v28  ;;  %v1335_v14 = vsub.f32 %v3630_v56, %v1257_v28 }
 0x3c4   : > { %v3810_v51 = vpop.eup %2765 }
 0x3c5   : > { %v3813_v37 = vpop.eup %2767  ;;  %2771 = vpow2.f32 %v1414_v32  ;;  %v3827_v32 = vmul.f32 0.088388346, %v1137_v23  ;;  %v1434_v54 = vmul.f32 1.442695, %v1335_v14 }
 0x3c6   : > { %v1531_v8 = vadd.f32 %v3813_v37, %v3810_v51  ;;  %v3822_v36 = vpop.eup %2769  ;;  %2773 = vpow2.f32 %v1420_v38 }
 0x3c7   : > { %v1254_v31 = vpop.xlane.xlu1 %1253  ;;  %2775 = vpow2.f32 %v1422_v4  ;;  %v1432_v4 = vmul.f32 1.442695, %v1334_v3 }
 0x3c8   : > { %v1332_v40 = vsub.f32 %v3622_v45, %v1254_v31  ;;  %v1333_v16 = vsub.f32 %v3624_v49, %v1254_v31  ;;  %2777 = vpow2.f32 %v1424_v24 }
 0x3c9   : > { %2779 = vpow2.f32 %v1426_v13 }
 0x3ca   : > { %v1428_v21 = vmul.f32 1.442695, %v1332_v40  ;;  %v1430_v23 = vmul.f32 1.442695, %v1333_v16  ;;  %v1263_v24 = vpop.xlane.xlu2 %1262 }
 0x3cb   : > { %1526 = vadd.xlane.f32.xlu1 %v1525_v47  ;;  %1517 = vadd.xlane.f32.xlu2 %v1516_v9  ;;  %v1048_v47 = vpop.f32.mrf.mxu0  ;;  %v1522_v9 = vadd.f32 %v3808_v18, %v3806_v63  ;;  %v3829_v15 = vpop.eup %2771  ;;  %v1338_v28 = vsub.f32 %v3640_v6, %v1263_v24  ;;  %v1339_v40 = vsub.f32 %v3642_v10, %v1263_v24 }
 0x3cc   : > { %v3825_v17 = vmul.f32 0.088388346, %v1048_v47  ;;  %v1528_v38 = vadd.f32 %v3829_v15, %v3822_v36  ;;  %2781 = vpow2.f32 %v1428_v21 }
 0x3cd   : > { %2783 = vpow2.f32 %v1430_v23  ;;  %v1442_v6 = vmul.f32 1.442695, %v1339_v40 }
 0x3ce   : > { %v1297_v45 = vmax.f32 %v3825_v17, %v3827_v32  ;;  %2785 = vpow2.f32 %v1432_v4 }
 0x3cf   : > { %v1260_v47 = vpop.xlane.xlu1 %1259  ;;  %2787 = vpow2.f32 %v1434_v54 }
 0x3d0   : > { %v1336_v56 = vsub.f32 %v3634_v61, %v1260_v47  ;;  %v1337_v13 = vsub.f32 %v3636_v1, %v1260_v47 }
 0x3d2   : > { %v1436_v16 = vmul.f32 1.442695, %v1336_v56  ;;  %v1438_v21 = vmul.f32 1.442695, %v1337_v13 }
 0x3d3   : > { %1532 = vadd.xlane.f32.xlu1 %v1531_v8  ;;  %1523 = vadd.xlane.f32.xlu2 %v1522_v9  ;;  %v3838_v8 = vpop.eup %2773 }
 0x3d4   : > { %v3840_v49 = vpop.eup %2775  ;;  %2789 = vpow2.f32 %v1436_v16 }
 0x3d5   : > { %v3842_v9 = vpop.eup %2777  ;;  %v1534_v3 = vadd.f32 %v3840_v49, %v3838_v8  ;;  %2791 = vpow2.f32 %v1438_v21 }
 0x3d6   : > { %v3845_v31 = vpop.eup %2779  ;;  %v1269_v23 = vpop.xlane.xlu2 %1268 }
 0x3d7   : > { %v1537_v14 = vadd.f32 %v3845_v31, %v3842_v9  ;;  %v1266_v61 = vpop.xlane.xlu1 %1265  ;;  %v1342_v24 = vsub.f32 %v3652_v29, %v1269_v23  ;;  %v1343_v56 = vsub.f32 %v3654_v34, %v1269_v23 }
 0x3d8   : > { %v1340_v10 = vsub.f32 %v3646_v11, %v1266_v61  ;;  %v1341_v54 = vsub.f32 %v3648_v20, %v1266_v61 }
 0x3d9   : > { %v1450_v29 = vmul.f32 1.442695, %v1343_v56 }
 0x3da   : > { %v1444_v13 = vmul.f32 1.442695, %v1340_v10  ;;  %v1446_v16 = vmul.f32 1.442695, %v1341_v54  ;;  %v4514_v10 = vld [vmem:[#allocation30_spill] sm:$0xff] }
 0x3db   : > { %1529 = vadd.xlane.f32.xlu2 %v1528_v38  ;;  %1298 = vmax.xlane.f32.xlu1 %v1297_v45  ;;  %v3854_v38 = vpop.eup %2781  ;;  %v1440_v45 = vmul.f32 1.442695, %v1338_v28 }
 0x3dc   : > { %v3856_v1 = vpop.eup %2783 }
 0x3dd   : > { %v3858_v47 = vpop.eup %2785  ;;  %2793 = vpow2.f32 %v1440_v45  ;;  %v1540_v28 = vadd.f32 %v3856_v1, %v3854_v38 }
 0x3de   : > { %v3861_v4 = vpop.eup %2787  ;;  %2795 = vpow2.f32 %v1442_v6 }
 0x3df   : > { %v1543_v40 = vadd.f32 %v3861_v4, %v3858_v47  ;;  %v1272_v11 = vpop.xlane.xlu1 %1271  ;;  %2797 = vpow2.f32 %v1444_v13 }
 0x3e0   : > { %v1344_v34 = vsub.f32 %v3658_v41, %v1272_v11  ;;  %2799 = vpow2.f32 %v1446_v16  ;;  %v1345_v6 = vsub.f32 %v3660_v46, %v1272_v11 }
 0x3e3   : > { %1535 = vadd.xlane.f32.xlu2 %v1534_v3  ;;  %1538 = vadd.xlane.f32.xlu1 %v1537_v14  ;;  %v3870_v3 = vpop.eup %2789  ;;  %v1448_v14 = vmul.f32 1.442695, %v1342_v24  ;;  %v1452_v24 = vmul.f32 1.442695, %v1344_v34  ;;  %v4516_v34 = vld [vmem:[#allocation32_spill] sm:$0xff] }
 0x3e4   : > { %v3872_v20 = vpop.eup %2791 }
 0x3e5   : > { %4511 = vst [vmem:[#allocation41_spill] sm:$0xff] %v3872_v20  ;;  %v3874_v61 = vpop.eup %2793  ;;  %2801 = vpow2.f32 %v1448_v14  ;;  %v1546_v56 = vadd.f32 %v3872_v20, %v3870_v3  ;;  %v4515_v14 = vld [vmem:[#allocation31_spill] sm:$0xff] }
 0x3e6   : > { %v1275_v21 = vpop.xlane.xlu2 %1274  ;;  %4512 = vst [vmem:[#allocation42_spill] sm:$0xff] %v3874_v61  ;;  %v3877_v45 = vpop.eup %2795  ;;  %2803 = vpow2.f32 %v1450_v29 }
 0x3e7   : > { %4513 = vst [vmem:[#allocation43_spill] sm:$0xff] %v3877_v45  ;;  %v1346_v23 = vsub.f32 %v3664_v55, %v1275_v21  ;;  %v1347_v54 = vsub.f32 %v4514_v10, %v1275_v21  ;;  %v1549_v13 = vadd.f32 %v3877_v45, %v3874_v61  ;;  %2805 = vpow2.f32 %v1452_v24  ;;  %v4517_v45 = vld [vmem:[#allocation33_spill] sm:$0xff] }
 0x3e9   : > { %v1456_v16 = vmul.f32 1.442695, %v1346_v23  ;;  %v1458_v55 = vmul.f32 1.442695, %v1347_v54  ;;  %v4518_v23 = vld [vmem:[#allocation34_spill] sm:$0xff] }
 0x3eb   : > { %1541 = vadd.xlane.f32.xlu2 %v1540_v28  ;;  %1544 = vadd.xlane.f32.xlu1 %v1543_v40  ;;  %v1454_v28 = vmul.f32 1.442695, %v1345_v6  ;;  %v3886_v40 = vpop.eup %2797 }
 0x3ec   : > { %v3888_v46 = vpop.eup %2799 }
 0x3ed   : > { %v3890_v11 = vpop.eup %2801  ;;  %2807 = vpow2.f32 %v1454_v28  ;;  %v1552_v54 = vadd.f32 %v3888_v46, %v3886_v40 }
 0x3ee   : > { %v1278_v41 = vpop.xlane.xlu1 %1277  ;;  %v3893_v21 = vpop.eup %2803  ;;  %2809 = vpow2.f32 %v1456_v16 }
 0x3ef   : > { %v1348_v29 = vsub.f32 %v4515_v14, %v1278_v41  ;;  %v1349_v10 = vsub.f32 %v4516_v34, %v1278_v41  ;;  %2811 = vpow2.f32 %v1458_v55  ;;  %v1555_v24 = vadd.f32 %v3893_v21, %v3890_v11  ;;  %v3902_v20 = vpop.eup %2805  ;;  %v4521_v34 = vld [vmem:[#allocation35_spill] sm:$0xff] }
 0x3f1   : > { %v1462_v14 = vmul.f32 1.442695, %v1349_v10  ;;  %v4522_v10 = vld [vmem:[#allocation36_spill] sm:$0xff] }
 0x3f3   : > { %1547 = vadd.xlane.f32.xlu2 %v1546_v56  ;;  %1550 = vadd.xlane.f32.xlu1 %v1549_v13  ;;  %v1460_v13 = vmul.f32 1.442695, %v1348_v29  ;;  %v3904_v41 = vpop.eup %2807 }
 0x3f5   : > { %2813 = vpow2.f32 %v1460_v13 }
 0x3f6   : > { %v1281_v6 = vpop.xlane.xlu2 %1280  ;;  %2815 = vpow2.f32 %v1462_v14 }
 0x3f7   : > { %v1350_v61 = vsub.f32 %v4517_v45, %v1281_v6  ;;  %v1351_v56 = vsub.f32 %v4518_v23, %v1281_v6  ;;  %v3906_v45 = vpop.eup %2809 }
 0x3f8   : > { %4519 = vst [vmem:[#allocation30_spill] sm:$0xff] %v3906_v45  ;;  %v3908_v55 = vpop.eup %2811 }
 0x3f9   : > { %v1464_v28 = vmul.f32 1.442695, %v1350_v61  ;;  %v1466_v16 = vmul.f32 1.442695, %v1351_v56  ;;  %4520 = vst [vmem:[#allocation31_spill] sm:$0xff] %v3908_v55  ;;  %v1558_v61 = vadd.f32 %v3904_v41, %v3902_v20 }
 0x3fb   : > { %1553 = vadd.xlane.f32.xlu2 %v1552_v54  ;;  %1556 = vadd.xlane.f32.xlu1 %v1555_v24  ;;  %2817 = vpow2.f32 %v1464_v28  ;;  %v1561_v54 = vadd.f32 %v3908_v55, %v3906_v45  ;;  %v3916_v56 = vpop.eup %2813 }
 0x3fc   : > { %2819 = vpow2.f32 %v1466_v16  ;;  %v3918_v13 = vpop.eup %2815 }
 0x3fd   : > { %4523 = vst [vmem:[#allocation32_spill] sm:$0xff] %v3918_v13 }
 0x3fe   : > { %v1284_v29 = vpop.xlane.xlu1 %1283 }
 0x3ff   : > { %v1352_v6 = vsub.f32 %v4521_v34, %v1284_v29  ;;  %v1353_v23 = vsub.f32 %v4522_v10, %v1284_v29 }
 0x401   : > { %v1468_v24 = vmul.f32 1.442695, %v1352_v6  ;;  %v1470_v14 = vmul.f32 1.442695, %v1353_v23  ;;  %v3920_v28 = vpop.eup %2817  ;;  %v1564_v6 = vadd.f32 %v3918_v13, %v3916_v56 }
 0x402   : > { %4524 = vst [vmem:[#allocation33_spill] sm:$0xff] %v3920_v28  ;;  %v3922_v34 = vpop.eup %2819 }
 0x403   : > { %1559 = vadd.xlane.f32.xlu2 %v1558_v61  ;;  %1562 = vadd.xlane.f32.xlu1 %v1561_v54  ;;  %4525 = vst [vmem:[#allocation34_spill] sm:$0xff] %v3922_v34  ;;  %2821 = vpow2.f32 %v1468_v24  ;;  %v1567_v61 = vadd.f32 %v3922_v34, %v3920_v28 }
 0x404   : > { %2823 = vpow2.f32 %v1470_v14 }
 0x406   : > { %v1287_v16 = vpop.xlane.xlu2 %1286 }
 0x407   : > { %v1354_v29 = vsub.f32 %v3688_v19, %v1287_v16  ;;  %v1355_v10 = vsub.f32 %v3691_v25, %v1287_v16 }
 0x409   : > { %v1472_v55 = vmul.f32 1.442695, %v1354_v29  ;;  %v1474_v45 = vmul.f32 1.442695, %v1355_v10  ;;  %v3930_v23 = vpop.eup %2821 }
 0x40a   : > { %4526 = vst [vmem:[#allocation35_spill] sm:$0xff] %v3930_v23  ;;  %v3932_v54 = vpop.eup %2823 }
 0x40b   : > { %2825 = vpow2.f32 %v1472_v55  ;;  %1565 = vadd.xlane.f32.xlu2 %v1564_v6  ;;  %1568 = vadd.xlane.f32.xlu1 %v1567_v61  ;;  %4527 = vst [vmem:[#allocation36_spill] sm:$0xff] %v3932_v54  ;;  %v1570_v10 = vadd.f32 %v3932_v54, %v3930_v23 }
 0x40c   : > { %2827 = vpow2.f32 %v1474_v45 }
 0x40e   : > { %v1290_v19 = vpop.xlane.xlu1 %1289 }
 0x40f   : > { %v1356_v25 = vsub.f32 %v3698_v5, %v1290_v19  ;;  %v1357_v24 = vsub.f32 %v3701_v26, %v1290_v19 }
 0x411   : > { %v3936_v14 = vpop.eup %2825  ;;  %v1476_v16 = vmul.f32 1.442695, %v1356_v25  ;;  %v1478_v29 = vmul.f32 1.442695, %v1357_v24 }
 0x412   : > { %4528 = vst [vmem:[#allocation44_spill] sm:$0xff] %v3936_v14  ;;  %v3940_v55 = vpop.eup %2827 }
 0x413   : > { %4529 = vst [vmem:[#allocation45_spill] sm:$0xff] %v3940_v55  ;;  %2829 = vpow2.f32 %v1476_v16  ;;  %1571 = vadd.xlane.f32.xlu2 %v1570_v10  ;;  %v1573_v45 = vadd.f32 %v3940_v55, %v3936_v14 }
 0x414   : > { %2831 = vpow2.f32 %v1478_v29 }
 0x415   : > { %1574 = vadd.xlane.f32.xlu1 %v1573_v45 }
 0x416   : > { %v1497_v6 = vpop.xlane.xlu1 %1496  ;;  %v1293_v5 = vpop.xlane.xlu2 %1292 }
 0x417   : > { %2833 = vrcp.f32 %v1497_v6  ;;  %v1358_v26 = vsub.f32 %v3712_v12, %v1293_v5  ;;  %v1359_v61 = vsub.f32 %v3715_v0, %v1293_v5  ;;  %vm1608_vm1 = vweird.f32 %v1497_v6 }
 0x419   : > { %v3946_v19 = vpop.eup %2829  ;;  %v1480_v24 = vmul.f32 1.442695, %v1358_v26  ;;  %v1482_v16 = vmul.f32 1.442695, %v1359_v61  ;;  %v1614_v26 = vand.u32 2147483648, %v1497_v6 }
 0x41a   : > { %4530 = vst [vmem:[#allocation46_spill] sm:$0xff] %v3946_v19  ;;  %v3948_v25 = vpop.eup %2831 }
 0x41b   : > { %4531 = vst [vmem:[#allocation47_spill] sm:$0xff] %v3948_v25  ;;  %v1576_v10 = vadd.f32 %v3948_v25, %v3946_v19  ;;  %2835 = vpow2.f32 %v1480_v24 }
 0x41c   : > { %2837 = vpow2.f32 %v1482_v16  ;;  %v1612_v16 = vand.u32 2147483647, %v1497_v6 }
 0x41d   : > { %v2834_v29 = vpop.eup %2833  ;;  %1577 = vadd.xlane.f32.xlu2 %v1576_v10 }
 0x41e   : > { %v1604_v45 = vmul.f32 %v2834_v29, %v1497_v6  ;;  %v1503_v55 = vpop.xlane.xlu1 %1502  ;;  %v3952_v12 = vpop.xlane.xlu2 %1493  ;;  %vm1609_vm0 = vweird.f32 %v2834_v29  ;;  %vm1613_vm3 = vcmp.eq.f32.partialorder %v1612_v16, 8.507059e+37 }
 0x41f   : > { %2839 = vrcp.f32 %v1503_v55  ;;  %v1296_v0 = vpop.xlane.xlu0 %1295  ;;  %vm1610_vm2 = vmor %vm1608_vm1, %vm1609_vm0  ;;  %v1597_v16 = vand.u32 2147483647, %v3952_v12  ;;  %vm1638_vm6 = vweird.f32 %v1503_v55  ;;  %vm1593_vm8 = vweird.f32 %v3952_v12 }
 0x420   : > { %v1605_v5 = vsub.f32 1.0, %v1604_v45  ;;  %2841 = vrcp.f32 %v3952_v12  ;;  %v1360_v61 = vsub.f32 %v3732_v33, %v1296_v0  ;;  %v1361_v10 = vsub.f32 %v3735_v27, %v1296_v0 }
 0x421   : > { %v3957_v14 = vpop.eup %2835  ;;  %v1615_v33 = vor.u32 1.1754944e-38, %v1614_v26  ;;  %vm3990_vm10 = vcmp.eq.f32.partialorder %v1597_v16, 8.507059e+37 }
 0x422   : > { %4532 = vst [vmem:[#allocation48_spill] sm:$0xff] %v3957_v14  ;;  %v1606_v24 = vmul.f32 %v2834_v29, %v1605_v5  ;;  %v3960_v25 = vpop.eup %2837  ;;  %v1484_v19 = vmul.f32 1.442695, %v1360_v61  ;;  %v1486_v45 = vmul.f32 1.442695, %v1361_v10 }
 0x423   : > { %4533 = vst [vmem:[#allocation49_spill] sm:$0xff] %v3960_v25  ;;  %v1579_v23 = vadd.f32 %v3960_v25, %v3957_v14  ;;  %v1642_v10 = vand.u32 2147483647, %v1503_v55 }
 0x424   : > { %v1607_v54 = vadd.f32 %v2834_v29, %v1606_v24  ;;  %2843 = vpow2.f32 %v1484_v19 }
 0x425   : > { %v2840_v34 = vpop.eup %2839  ;;  %2845 = vpow2.f32 %v1486_v45  ;;  %1580 = vadd.xlane.f32.xlu0 %v1579_v23  ;;  %v1599_v23 = vand.u32 2147483648, %v3952_v12  ;;  %vm3985_vm7 = vcmp.eq.f32.partialorder %v1642_v10, 8.507059e+37 }
 0x426   : > { %v2842_v5 = vpop.eup %2841  ;;  %v1611_v28 = vsel %vm1610_vm2, %v2834_v29, %v1607_v54  ;;  %v1634_v13 = vmul.f32 %v2840_v34, %v1503_v55  ;;  %v3966_v27 = vpop.xlane.xlu1 %1508  ;;  %v1644_v54 = vand.u32 2147483648, %v1503_v55  ;;  %vm1639_vm4 = vweird.f32 %v2840_v34 }
 0x427   : > { %v3968_v0 = vpop.xlane.xlu2 %1499  ;;  %v1616_v61 = vsel %vm1613_vm3, %v1615_v33, %v1611_v28  ;;  %v1589_v6 = vmul.f32 %v2842_v5, %v3952_v12  ;;  %2847 = vrcp.f32 %v3966_v27  ;;  %vm1594_vm5 = vweird.f32 %v2842_v5  ;;  %vm1640_vm9 = vmor %vm1638_vm6, %vm1639_vm4  ;;  %v4540_v33 = vld [vmem:[#allocation37_spill] sm:$0xff] }
 0x428   : > { %v2070_v24 = vmul.f32 %v3706_v39, %v1616_v61  ;;  %v2071_v26 = vmul.f32 %v3709_v60, %v1616_v61  ;;  %v1635_v19 = vsub.f32 1.0, %v1634_v13  ;;  %2849 = vrcp.f32 %v3968_v0  ;;  %vm1595_vm11 = vmor %vm1593_vm8, %vm1594_vm5 }
 0x429   : > { %v1590_v29 = vsub.f32 1.0, %v1589_v6  ;;  %v1645_v6 = vor.u32 1.1754944e-38, %v1644_v54  ;;  %v1600_v55 = vor.u32 1.1754944e-38, %v1599_v23  ;;  %v1674_v14 = vand.u32 2147483648, %v3966_v27 }
 0x42a   : > { %2134 = vst [vmem:[%s3976_s11 + $0x10] sm:$0xff] %v2070_v24  ;;  %v1636_v28 = vmul.f32 %v2840_v34, %v1635_v19  ;;  %v3980_v39 = vpop.eup %2843  ;;  %vm1668_vm13 = vweird.f32 %v3966_v27  ;;  %vm1623_vm14 = vweird.f32 %v3968_v0 }
 0x42b   : > { %4534 = vst [vmem:[#allocation50_spill] sm:$0xff] %v3980_v39  ;;  %v1591_v60 = vmul.f32 %v2842_v5, %v1590_v29  ;;  %v3983_v13 = vpop.eup %2845 }
 0x42c   : > { %2135 = vst [vmem:[%s3976_s11 + $0x18] sm:$0xff] %v2071_v26  ;;  %v1637_v45 = vadd.f32 %v2840_v34, %v1636_v28  ;;  %v1582_v26 = vadd.f32 %v3983_v13, %v3980_v39  ;;  %v1672_v28 = vand.u32 2147483647, %v3966_v27 }
 0x42d   : > { %4535 = vst [vmem:[#allocation51_spill] sm:$0xff] %v3983_v13  ;;  %v2848_v61 = vpop.eup %2847  ;;  %v1592_v24 = vadd.f32 %v2842_v5, %v1591_v60 }
 0x42e   : > { %v1641_v29 = vsel %vm1640_vm9, %v2840_v34, %v1637_v45  ;;  %v1664_v10 = vmul.f32 %v2848_v61, %v3966_v27  ;;  %v3998_v25 = vpop.xlane.xlu1 %1514  ;;  %v2850_v54 = vpop.eup %2849  ;;  %1583 = vadd.xlane.f32.xlu1 %v1582_v26  ;;  %vm1669_vm12 = vweird.f32 %v2848_v61  ;;  %vm1673_vm0 = vcmp.eq.f32.partialorder %v1672_v28, 8.507059e+37 }
 0x42f   : > { %v4000_v12 = vpop.xlane.xlu2 %1505  ;;  %v1646_v16 = vsel %vm3985_vm7, %v1645_v6, %v1641_v29  ;;  %v1596_v60 = vsel %vm1595_vm11, %v2842_v5, %v1592_v24  ;;  %2851 = vrcp.f32 %v3998_v25  ;;  %v1619_v6 = vmul.f32 %v2850_v54, %v3968_v0  ;;  %vm1670_vm15 = vmor %vm1668_vm13, %vm1669_vm12 }
 0x430   : > { %v2074_v34 = vmul.f32 %v3726_v44, %v1646_v16  ;;  %v2075_v23 = vmul.f32 %v3729_v50, %v1646_v16  ;;  %v1601_v45 = vsel %vm3990_vm10, %v1600_v55, %v1596_v60  ;;  %v1665_v13 = vsub.f32 1.0, %v1664_v10 }
 0x431   : > { %v2068_v39 = vmul.f32 %v3722_v2, %v1601_v45  ;;  %v2069_v5 = vmul.f32 %v4540_v33, %v1601_v45  ;;  %v1627_v24 = vand.u32 2147483647, %v3968_v0  ;;  %v1629_v44 = vand.u32 2147483648, %v3968_v0 }
 0x432   : > { %2138 = vst [vmem:[%s3976_s11 + $0x30] sm:$0xff] %v2074_v34  ;;  %v1666_v26 = vmul.f32 %v2848_v61, %v1665_v13  ;;  %2853 = vrcp.f32 %v4000_v12  ;;  %v1620_v50 = vsub.f32 1.0, %v1619_v6  ;;  %v1675_v29 = vor.u32 1.1754944e-38, %v1674_v14 }
 0x433   : > { %2139 = vst [vmem:[%s3976_s11 + $0x38] sm:$0xff] %v2075_v23  ;;  %vm1624_vm1 = vweird.f32 %v2850_v54  ;;  %vm4022_vm2 = vcmp.eq.f32.partialorder %v1627_v24, 8.507059e+37  ;;  %v1630_v16 = vor.u32 1.1754944e-38, %v1629_v44  ;;  %v1702_v28 = vand.u32 2147483647, %v3998_v25 }
 0x434   : > { %2132 = vst [vmem:[%s3976_s11] sm:$0xff] %v2068_v39  ;;  %v1667_v19 = vadd.f32 %v2848_v61, %v1666_v26  ;;  %v1621_v55 = vmul.f32 %v2850_v54, %v1620_v50  ;;  %vm1625_vm3 = vmor %vm1623_vm14, %vm1624_vm1  ;;  %v1657_v26 = vand.u32 2147483647, %v4000_v12  ;;  %v1659_v44 = vand.u32 2147483648, %v4000_v12 }
 0x435   : > { %v2852_v2 = vpop.eup %2851  ;;  %2133 = vst [vmem:[%s3976_s11 + $0x8] sm:$0xff] %v2069_v5  ;;  %v1704_v5 = vand.u32 2147483648, %v3998_v25  ;;  %vm1698_vm5 = vweird.f32 %v3998_v25  ;;  %vm1653_vm6 = vweird.f32 %v4000_v12  ;;  %vm1703_vm8 = vcmp.eq.f32.partialorder %v1702_v28, 8.507059e+37 }
 0x436   : > { %v1671_v13 = vsel %vm1670_vm15, %v2848_v61, %v1667_v19  ;;  %v1694_v39 = vmul.f32 %v2852_v2, %v3998_v25  ;;  %v4027_v60 = vpop.xlane.xlu1 %1520  ;;  %v1622_v23 = vadd.f32 %v2850_v54, %v1621_v55  ;;  %vm1699_vm4 = vweird.f32 %v2852_v2 }
 0x437   : > { %v4029_v27 = vpop.xlane.xlu2 %1511  ;;  %v1676_v34 = vsel %vm1673_vm0, %v1675_v29, %v1671_v13  ;;  %2855 = vrcp.f32 %v4027_v60  ;;  %vm1700_vm7 = vmor %vm1698_vm5, %vm1699_vm4  ;;  %v1705_v55 = vor.u32 1.1754944e-38, %v1704_v5  ;;  %vm4052_vm10 = vcmp.eq.f32.partialorder %v1657_v26, 8.507059e+37 }
 0x438   : > { %v2854_v14 = vpop.eup %2853  ;;  %v2078_v61 = vmul.f32 %v3748_v43, %v1676_v34  ;;  %v2079_v45 = vmul.f32 %v3751_v59, %v1676_v34  ;;  %v1695_v33 = vsub.f32 1.0, %v1694_v39  ;;  %v1626_v6 = vsel %vm1625_vm3, %v2850_v54, %v1622_v23 }
 0x439   : > { %v1649_v24 = vmul.f32 %v2854_v14, %v4000_v12  ;;  %v1631_v43 = vsel %vm4022_vm2, %v1630_v16, %v1626_v6  ;;  %2857 = vrcp.f32 %v4029_v27  ;;  %vm1654_vm9 = vweird.f32 %v2854_v14 }
 0x43a   : > { %2142 = vst [vmem:[%s3976_s11 + $0x50] sm:$0xff] %v2078_v61  ;;  %v1696_v50 = vmul.f32 %v2852_v2, %v1695_v33  ;;  %v2072_v59 = vmul.f32 %v3744_v7, %v1631_v43  ;;  %v2073_v0 = vmul.f32 %v3746_v35, %v1631_v43  ;;  %v1660_v7 = vor.u32 1.1754944e-38, %v1659_v44  ;;  %vm1655_vm11 = vmor %vm1653_vm6, %vm1654_vm9 }
 0x43b   : > { %2143 = vst [vmem:[%s3976_s11 + $0x58] sm:$0xff] %v2079_v45  ;;  %v1650_v54 = vsub.f32 1.0, %v1649_v24  ;;  %v1732_v28 = vand.u32 2147483647, %v4027_v60  ;;  %v1734_v5 = vand.u32 2147483648, %v4027_v60  ;;  %v1689_v44 = vand.u32 2147483648, %v4029_v27 }
 0x43c   : > { %v1697_v19 = vadd.f32 %v2852_v2, %v1696_v50  ;;  %2136 = vst [vmem:[%s3976_s11 + $0x20] sm:$0xff] %v2072_v59  ;;  %v1687_v26 = vand.u32 2147483647, %v4029_v27  ;;  %vm1728_vm13 = vweird.f32 %v4027_v60  ;;  %vm1683_vm0 = vweird.f32 %v4029_v27 }
 0x43d   : > { %v2856_v29 = vpop.eup %2855  ;;  %v1651_v13 = vmul.f32 %v2854_v14, %v1650_v54  ;;  %2137 = vst [vmem:[%s3976_s11 + $0x28] sm:$0xff] %v2073_v0  ;;  %vm1733_vm14 = vcmp.eq.f32.partialorder %v1732_v28, 8.507059e+37  ;;  %v1735_v0 = vor.u32 1.1754944e-38, %v1734_v5 }
 0x43e   : > { %v1701_v10 = vsel %vm1700_vm7, %v2852_v2, %v1697_v19  ;;  %v1724_v35 = vmul.f32 %v2856_v29, %v4027_v60  ;;  %v4057_v39 = vpop.xlane.xlu1 %1526  ;;  %vm1729_vm12 = vweird.f32 %v2856_v29  ;;  %vm4083_vm2 = vcmp.eq.f32.partialorder %v1687_v26, 8.507059e+37 }
 0x43f   : > { %v4059_v25 = vpop.xlane.xlu2 %1517  ;;  %v1706_v34 = vsel %vm1703_vm8, %v1705_v55, %v1701_v10  ;;  %v1652_v23 = vadd.f32 %v2854_v14, %v1651_v13  ;;  %2859 = vrcp.f32 %v4057_v39  ;;  %v2858_v2 = vpop.eup %2857  ;;  %vm1730_vm15 = vmor %vm1728_vm13, %vm1729_vm12  ;;  %v1764_v28 = vand.u32 2147483648, %v4057_v39 }
 0x440   : > { %v2082_v61 = vmul.f32 %v3764_v52, %v1706_v34  ;;  %v2083_v45 = vmul.f32 %v3767_v53, %v1706_v34  ;;  %v1725_v33 = vsub.f32 1.0, %v1724_v35  ;;  %v1679_v24 = vmul.f32 %v2858_v2, %v4029_v27 }
 0x441   : > { %v1656_v6 = vsel %vm1655_vm11, %v2854_v14, %v1652_v23  ;;  %2861 = vrcp.f32 %v4059_v25  ;;  %vm1684_vm1 = vweird.f32 %v2858_v2  ;;  %v1719_v5 = vand.u32 2147483648, %v4059_v25 }
 0x442   : > { %2146 = vst [vmem:[%s3976_s11 + $0x70] sm:$0xff] %v2082_v61  ;;  %v1661_v52 = vsel %vm4052_vm10, %v1660_v7, %v1656_v6  ;;  %v1726_v53 = vmul.f32 %v2856_v29, %v1725_v33  ;;  %v1680_v43 = vsub.f32 1.0, %v1679_v24  ;;  %v1762_v7 = vand.u32 2147483647, %v4057_v39  ;;  %vm1685_vm3 = vmor %vm1683_vm0, %vm1684_vm1 }
 0x443   : > { %2147 = vst [vmem:[%s3976_s11 + $0x78] sm:$0xff] %v2083_v45  ;;  %v2076_v12 = vmul.f32 %v3760_v42, %v1661_v52  ;;  %v2077_v14 = vmul.f32 %v3762_v48, %v1661_v52  ;;  %v1690_v42 = vor.u32 1.1754944e-38, %v1689_v44  ;;  %v1717_v33 = vand.u32 2147483647, %v4059_v25 }
 0x444   : > { %v1727_v50 = vadd.f32 %v2856_v29, %v1726_v53  ;;  %v1681_v54 = vmul.f32 %v2858_v2, %v1680_v43  ;;  %vm1758_vm5 = vweird.f32 %v4057_v39  ;;  %vm1763_vm6 = vcmp.eq.f32.partialorder %v1762_v7, 8.507059e+37 }
 0x445   : > { %v2860_v59 = vpop.eup %2859  ;;  %2140 = vst [vmem:[%s3976_s11 + $0x40] sm:$0xff] %v2076_v12  ;;  %v1765_v44 = vor.u32 1.1754944e-38, %v1764_v28  ;;  %vm1713_vm8 = vweird.f32 %v4059_v25  ;;  %vm4114_vm10 = vcmp.eq.f32.partialorder %v1717_v33, 8.507059e+37 }
 0x446   : > { %2141 = vst [vmem:[%s3976_s11 + $0x48] sm:$0xff] %v2077_v14  ;;  %v1731_v19 = vsel %vm1730_vm15, %v2856_v29, %v1727_v50  ;;  %v1754_v48 = vmul.f32 %v2860_v59, %v4057_v39  ;;  %v4088_v13 = vpop.xlane.xlu1 %1532  ;;  %v1682_v16 = vadd.f32 %v2858_v2, %v1681_v54  ;;  %vm1759_vm4 = vweird.f32 %v2860_v59 }
 0x447   : > { %v4090_v60 = vpop.xlane.xlu2 %1523  ;;  %v1736_v10 = vsel %vm1733_vm14, %v1735_v0, %v1731_v19  ;;  %2863 = vrcp.f32 %v4088_v13  ;;  %v2862_v29 = vpop.eup %2861  ;;  %vm1760_vm7 = vmor %vm1758_vm5, %vm1759_vm4  ;;  %v1792_v0 = vand.u32 2147483647, %v4088_v13  ;;  %v4549_v19 = vld [vmem:[#allocation40_spill] sm:$0xff]  ;;  %vm1788_vm12 = vweird.f32 %v4088_v13 }
 0x448   : > { %v2086_v35 = vmul.f32 %v3780_v30, %v1736_v10  ;;  %v2087_v34 = vmul.f32 %v3783_v62, %v1736_v10  ;;  %v1755_v23 = vsub.f32 1.0, %v1754_v48  ;;  %v1686_v61 = vsel %vm1685_vm3, %v2858_v2, %v1682_v16 }
 0x449   : > { %v1709_v45 = vmul.f32 %v2862_v29, %v4059_v25  ;;  %v1691_v30 = vsel %vm4083_vm2, %v1690_v42, %v1686_v61  ;;  %2865 = vrcp.f32 %v4090_v60  ;;  %vm1714_vm9 = vweird.f32 %v2862_v29 }
 0x44a   : > { %2150 = vst [vmem:[%s3976_s11 + $0x90] sm:$0xff] %v2086_v35  ;;  %v1756_v62 = vmul.f32 %v2860_v59, %v1755_v23  ;;  %v2080_v27 = vmul.f32 %v3776_v22, %v1691_v30  ;;  %v2081_v2 = vmul.f32 %v3778_v58, %v1691_v30  ;;  %v1720_v22 = vor.u32 1.1754944e-38, %v1719_v5  ;;  %vm1715_vm11 = vmor %vm1713_vm8, %vm1714_vm9 }
 0x44b   : > { %2151 = vst [vmem:[%s3976_s11 + $0x98] sm:$0xff] %v2087_v34  ;;  %v1710_v6 = vsub.f32 1.0, %v1709_v45  ;;  %v1794_v10 = vand.u32 2147483648, %v4088_v13  ;;  %v1747_v7 = vand.u32 2147483647, %v4090_v60  ;;  %v4550_v34 = vld [vmem:[#allocation38_spill] sm:$0xff]  ;;  %vm1743_vm0 = vweird.f32 %v4090_v60 }
 0x44c   : > { %v1757_v24 = vadd.f32 %v2860_v59, %v1756_v62  ;;  %2144 = vst [vmem:[%s3976_s11 + $0x60] sm:$0xff] %v2080_v27  ;;  %vm4139_vm14 = vcmp.eq.f32.partialorder %v1792_v0, 8.507059e+37  ;;  %v1749_v5 = vand.u32 2147483648, %v4090_v60 }
 0x44d   : > { %v2864_v26 = vpop.eup %2863  ;;  %v1711_v52 = vmul.f32 %v2862_v29, %v1710_v6  ;;  %2145 = vst [vmem:[%s3976_s11 + $0x68] sm:$0xff] %v2081_v2  ;;  %vm4150_vm2 = vcmp.eq.f32.partialorder %v1747_v7, 8.507059e+37 }
 0x44e   : > { %v1761_v53 = vsel %vm1760_vm7, %v2860_v59, %v1757_v24  ;;  %v1784_v58 = vmul.f32 %v2864_v26, %v4088_v13  ;;  %v1299_v39 = vpop.xlane.xlu1 %1298  ;;  %vm1789_vm13 = vweird.f32 %v2864_v26 }
 0x44f   : > { %v4119_v14 = vpop.xlane.xlu2 %1529  ;;  %v1766_v43 = vsel %vm1763_vm6, %v1765_v44, %v1761_v53  ;;  %v1712_v50 = vadd.f32 %v2862_v29, %v1711_v52  ;;  %v2866_v54 = vpop.eup %2865  ;;  %v1362_v25 = vsub.f32 %v3825_v17, %v1299_v39  ;;  %v1363_v30 = vsub.f32 %v3827_v32, %v1299_v39  ;;  %vm1790_vm15 = vmor %vm1788_vm12, %vm1789_vm13 }
 0x450   : > { %2867 = vrcp.f32 %v4119_v14  ;;  %v2090_v59 = vmul.f32 %v3796_v57, %v1766_v43  ;;  %v2091_v55 = vmul.f32 %v4549_v19, %v1766_v43  ;;  %v1785_v42 = vsub.f32 1.0, %v1784_v58 }
 0x451   : > { %v1716_v48 = vsel %vm1715_vm11, %v2862_v29, %v1712_v50  ;;  %v1739_v16 = vmul.f32 %v2866_v54, %v4090_v60  ;;  %v4551_v29 = vld [vmem:[#allocation39_spill] sm:$0xff]  ;;  %v1488_v62 = vmul.f32 1.442695, %v1362_v25  ;;  %v1795_v17 = vor.u32 1.1754944e-38, %v1794_v10 }
 0x452   : > { %2154 = vst [vmem:[%s3976_s11 + $0xb0] sm:$0xff] %v2090_v59  ;;  %v1721_v57 = vsel %vm4114_vm10, %v1720_v22, %v1716_v48  ;;  %v1786_v35 = vmul.f32 %v2864_v26, %v1785_v42  ;;  %vm1744_vm1 = vweird.f32 %v2866_v54  ;;  %v1490_v12 = vmul.f32 1.442695, %v1363_v30 }
 0x453   : > { %2155 = vst [vmem:[%s3976_s11 + $0xb8] sm:$0xff] %v2091_v55  ;;  %v2084_v23 = vmul.f32 %v4550_v34, %v1721_v57  ;;  %v2085_v28 = vmul.f32 %v4551_v29, %v1721_v57  ;;  %v1740_v45 = vsub.f32 1.0, %v1739_v16  ;;  %2869 = vpow2.f32 %v1488_v62  ;;  %vm1745_vm3 = vmor %vm1743_vm0, %vm1744_vm1 }
 0x454   : > { %v1787_v33 = vadd.f32 %v2864_v26, %v1786_v35  ;;  %v1750_v58 = vor.u32 1.1754944e-38, %v1749_v5  ;;  %v1777_v50 = vand.u32 2147483647, %v4119_v14  ;;  %v1779_v0 = vand.u32 2147483648, %v4119_v14 }
 0x455   : > { %2148 = vst [vmem:[%s3976_s11 + $0x80] sm:$0xff] %v2084_v23  ;;  %v1741_v2 = vmul.f32 %v2866_v54, %v1740_v45  ;;  %vm1773_vm5 = vweird.f32 %v4119_v14 }
 0x456   : > { %v2868_v27 = vpop.eup %2867  ;;  %2149 = vst [vmem:[%s3976_s11 + $0x88] sm:$0xff] %v2085_v28  ;;  %v1791_v6 = vsel %vm1790_vm15, %v2864_v26, %v1787_v33  ;;  %v4157_v52 = vpop.xlane.xlu1 %1538  ;;  %v1780_v42 = vor.u32 1.1754944e-38, %v1779_v0  ;;  %vm1778_vm7 = vcmp.eq.f32.partialorder %v1777_v50, 8.507059e+37 }
 0x457   : > { %v1769_v44 = vmul.f32 %v2868_v27, %v4119_v14  ;;  %v4155_v32 = vpop.xlane.xlu2 %1535  ;;  %v1796_v13 = vsel %vm4139_vm14, %v1795_v17, %v1791_v6  ;;  %v1742_v53 = vadd.f32 %v2866_v54, %v1741_v2  ;;  %vm1774_vm4 = vweird.f32 %v2868_v27 }
 0x458   : > { %2871 = vrcp.f32 %v4155_v32  ;;  %v2094_v26 = vmul.f32 %v3810_v51, %v1796_v13  ;;  %v2095_v22 = vmul.f32 %v3813_v37, %v1796_v13  ;;  %vm1775_vm6 = vmor %vm1773_vm5, %vm1774_vm4  ;;  %v1809_v23 = vand.u32 2147483648, %v4155_v32 }
 0x459   : > { %v1770_v39 = vsub.f32 1.0, %v1769_v44  ;;  %v1746_v43 = vsel %vm1745_vm3, %v2866_v54, %v1742_v53  ;;  %2873 = vpow2.f32 %v1490_v12  ;;  %v4175_v54 = vpop.eup %2869  ;;  %v1807_v61 = vand.u32 2147483647, %v4155_v32 }
 0x45a   : > { %2158 = vst [vmem:[%s3976_s11 + $0xd0] sm:$0xff] %v2094_v26  ;;  %v1751_v59 = vsel %vm4150_vm2, %v1750_v58, %v1746_v43  ;;  %2875 = vrcp.f32 %v4157_v52  ;;  %vm1803_vm9 = vweird.f32 %v4155_v32  ;;  %v1824_v33 = vand.u32 2147483648, %v4157_v52 }
 0x45b   : > { %v1771_v51 = vmul.f32 %v2868_v27, %v1770_v39  ;;  %2159 = vst [vmem:[%s3976_s11 + $0xd8] sm:$0xff] %v2095_v22  ;;  %v2088_v37 = vmul.f32 %v3806_v63, %v1751_v59  ;;  %v2089_v60 = vmul.f32 %v3808_v18, %v1751_v59  ;;  %v1810_v30 = vor.u32 1.1754944e-38, %v1809_v23 }
 0x45c   : > { %vm1808_vm12 = vcmp.eq.f32.partialorder %v1807_v61, 8.507059e+37  ;;  %vm1818_vm13 = vweird.f32 %v4157_v52 }
 0x45d   : > { %v1772_v19 = vadd.f32 %v2868_v27, %v1771_v51  ;;  %2152 = vst [vmem:[%s3976_s11 + $0xa0] sm:$0xff] %v2088_v37 }
 0x45e   : > { %v2872_v55 = vpop.eup %2871  ;;  %2153 = vst [vmem:[%s3976_s11 + $0xa8] sm:$0xff] %v2089_v60  ;;  %v4183_v63 = vpop.xlane.xlu1 %1544 }
 0x45f   : > { %v1776_v48 = vsel %vm1775_vm6, %v2868_v27, %v1772_v19  ;;  %v1799_v10 = vmul.f32 %v2872_v55, %v4155_v32  ;;  %v4181_v16 = vpop.xlane.xlu2 %1541  ;;  %v4185_v18 = vpop.eup %2873  ;;  %vm1804_vm8 = vweird.f32 %v2872_v55  ;;  %v1852_v59 = vand.u32 2147483647, %v4183_v63 }
 0x460   : > { %v1781_v7 = vsel %vm1778_vm7, %v1780_v42, %v1776_v48  ;;  %2877 = vrcp.f32 %v4181_v16  ;;  %v2876_v14 = vpop.eup %2875  ;;  %v1585_v34 = vadd.f32 %v4185_v18, %v4175_v54  ;;  %vm1805_vm10 = vmor %vm1803_vm9, %vm1804_vm8  ;;  %v1837_v22 = vand.u32 2147483647, %v4181_v16 }
 0x461   : > { %v2092_v57 = vmul.f32 %v3822_v36, %v1781_v7  ;;  %v2093_v35 = vmul.f32 %v3829_v15, %v1781_v7  ;;  %v1800_v25 = vsub.f32 1.0, %v1799_v10  ;;  %v1814_v29 = vmul.f32 %v2876_v14, %v4157_v52 }
 0x462   : > { %1586 = vadd.xlane.f32.xlu2 %v1585_v34  ;;  %2879 = vrcp.f32 %v4183_v63  ;;  %v1822_v15 = vand.u32 2147483647, %v4157_v52  ;;  %vm1819_vm11 = vweird.f32 %v2876_v14  ;;  %v1825_v52 = vor.u32 1.1754944e-38, %v1824_v33 }
 0x463   : > { %2156 = vst [vmem:[%s3976_s11 + $0xc0] sm:$0xff] %v2092_v57  ;;  %v1801_v28 = vmul.f32 %v2872_v55, %v1800_v25  ;;  %v1815_v36 = vsub.f32 1.0, %v1814_v29  ;;  %vm1820_vm15 = vmor %vm1818_vm13, %vm1819_vm11  ;;  %v1839_v58 = vand.u32 2147483648, %v4181_v16  ;;  %vm1833_vm1 = vweird.f32 %v4181_v16 }
 0x464   : > { %2157 = vst [vmem:[%s3976_s11 + $0xc8] sm:$0xff] %v2093_v35  ;;  %vm1823_vm14 = vcmp.eq.f32.partialorder %v1822_v15, 8.507059e+37  ;;  %v1854_v37 = vand.u32 2147483648, %v4183_v63  ;;  %vm1838_vm4 = vcmp.eq.f32.partialorder %v1837_v22, 8.507059e+37  ;;  %vm1848_vm5 = vweird.f32 %v4183_v63 }
 0x465   : > { %v1802_v45 = vadd.f32 %v2872_v55, %v1801_v28  ;;  %v1816_v62 = vmul.f32 %v2876_v14, %v1815_v36  ;;  %v1840_v19 = vor.u32 1.1754944e-38, %v1839_v58  ;;  %vm1853_vm6 = vcmp.eq.f32.partialorder %v1852_v59, 8.507059e+37 }
 0x466   : > { %v2878_v5 = vpop.eup %2877  ;;  %v4205_v6 = vpop.xlane.xlu1 %1550 }
 0x467   : > { %v1806_v27 = vsel %vm1805_vm10, %v2872_v55, %v1802_v45  ;;  %v1829_v17 = vmul.f32 %v2878_v5, %v4181_v16  ;;  %v4203_v2 = vpop.xlane.xlu2 %1547  ;;  %v1817_v44 = vadd.f32 %v2876_v14, %v1816_v62  ;;  %vm1834_vm0 = vweird.f32 %v2878_v5 }
 0x468   : > { %v1811_v24 = vsel %vm1808_vm12, %v1810_v30, %v1806_v27  ;;  %2881 = vrcp.f32 %v4203_v2  ;;  %v2880_v32 = vpop.eup %2879  ;;  %vm1835_vm2 = vmor %vm1833_vm1, %vm1834_vm0  ;;  %v1867_v34 = vand.u32 2147483647, %v4203_v2  ;;  %v1869_v23 = vand.u32 2147483648, %v4203_v2 }
 0x469   : > { %v2096_v13 = vmul.f32 %v3838_v8, %v1811_v24  ;;  %v2097_v53 = vmul.f32 %v3840_v49, %v1811_v24  ;;  %v1830_v12 = vsub.f32 1.0, %v1829_v17  ;;  %v1821_v26 = vsel %vm1820_vm15, %v2876_v14, %v1817_v44 }
 0x46a   : > { %v1844_v39 = vmul.f32 %v2880_v32, %v4183_v63  ;;  %v1826_v43 = vsel %vm1823_vm14, %v1825_v52, %v1821_v26  ;;  %2883 = vrcp.f32 %v4205_v6  ;;  %vm1849_vm3 = vweird.f32 %v2880_v32 }
 0x46b   : > { %2160 = vst [vmem:[%s3976_s11 + $0xe0] sm:$0xff] %v2096_v13  ;;  %v1831_v50 = vmul.f32 %v2878_v5, %v1830_v12  ;;  %v2098_v8 = vmul.f32 %v3842_v9, %v1826_v43  ;;  %v2099_v49 = vmul.f32 %v3845_v31, %v1826_v43  ;;  %vm1850_vm7 = vmor %vm1848_vm5, %vm1849_vm3  ;;  %v1855_v63 = vor.u32 1.1754944e-38, %v1854_v37  ;;  %v4556_v13 = vld [vmem:[#allocation41_spill] sm:$0xff] }
 0x46c   : > { %2161 = vst [vmem:[%s3976_s11 + $0xe8] sm:$0xff] %v2097_v53  ;;  %v1845_v0 = vsub.f32 1.0, %v1844_v39  ;;  %v1882_v15 = vand.u32 2147483647, %v4205_v6  ;;  %vm1863_vm9 = vweird.f32 %v4203_v2  ;;  %v1884_v33 = vand.u32 2147483648, %v4205_v6 }
 0x46d   : > { %v1832_v51 = vadd.f32 %v2878_v5, %v1831_v50  ;;  %2162 = vst [vmem:[%s3976_s11 + $0xf0] sm:$0xff] %v2098_v8  ;;  %v1870_v30 = vor.u32 1.1754944e-38, %v1869_v23  ;;  %vm1868_vm12 = vcmp.eq.f32.partialorder %v1867_v34, 8.507059e+37  ;;  %vm1878_vm13 = vweird.f32 %v4205_v6  ;;  %v4558_v8 = vld [vmem:[#allocation43_spill] sm:$0xff] }
 0x46e   : > { %v2882_v60 = vpop.eup %2881  ;;  %v1846_v55 = vmul.f32 %v2880_v32, %v1845_v0  ;;  %2163 = vst [vmem:[%s3976_s11 + $0xf8] sm:$0xff] %v2099_v49  ;;  %v4227_v48 = vpop.xlane.xlu1 %1556  ;;  %vm1883_vm14 = vcmp.eq.f32.partialorder %v1882_v15, 8.507059e+37 }
 0x46f   : > { %v1836_v42 = vsel %vm1835_vm2, %v2878_v5, %v1832_v51  ;;  %v1859_v9 = vmul.f32 %v2882_v60, %v4203_v2  ;;  %v4225_v31 = vpop.xlane.xlu2 %1553  ;;  %vm1864_vm8 = vweird.f32 %v2882_v60  ;;  %v1912_v59 = vand.u32 2147483647, %v4227_v48 }
 0x470   : > { %v1841_v10 = vsel %vm1838_vm4, %v1840_v19, %v1836_v42  ;;  %v1847_v16 = vadd.f32 %v2880_v32, %v1846_v55  ;;  %2885 = vrcp.f32 %v4225_v31  ;;  %v2884_v7 = vpop.eup %2883  ;;  %vm1865_vm10 = vmor %vm1863_vm9, %vm1864_vm8  ;;  %v1897_v26 = vand.u32 2147483647, %v4225_v31 }
 0x471   : > { %v2100_v14 = vmul.f32 %v3854_v38, %v1841_v10  ;;  %v2101_v57 = vmul.f32 %v3856_v1, %v1841_v10  ;;  %v1860_v35 = vsub.f32 1.0, %v1859_v9  ;;  %v1874_v29 = vmul.f32 %v2884_v7, %v4205_v6 }
 0x472   : > { %v1851_v25 = vsel %vm1850_vm7, %v2880_v32, %v1847_v16  ;;  %2887 = vrcp.f32 %v4227_v48  ;;  %vm1879_vm11 = vweird.f32 %v2884_v7  ;;  %v1885_v6 = vor.u32 1.1754944e-38, %v1884_v33 }
 0x473   : > { %2164 = vst [vmem:[%s3976_s11 + $0x100] sm:$0xff] %v2100_v14  ;;  %v1856_v28 = vsel %vm1853_vm6, %v1855_v63, %v1851_v25  ;;  %v1861_v61 = vmul.f32 %v2882_v60, %v1860_v35  ;;  %v1875_v36 = vsub.f32 1.0, %v1874_v29  ;;  %vm1880_vm15 = vmor %vm1878_vm13, %vm1879_vm11  ;;  %v1899_v22 = vand.u32 2147483648, %v4225_v31 }
 0x474   : > { %2165 = vst [vmem:[%s3976_s11 + $0x108] sm:$0xff] %v2101_v57  ;;  %v2102_v38 = vmul.f32 %v3858_v47, %v1856_v28  ;;  %v2103_v1 = vmul.f32 %v3861_v4, %v1856_v28  ;;  %vm1893_vm1 = vweird.f32 %v4225_v31  ;;  %v1914_v37 = vand.u32 2147483648, %v4227_v48 }
 0x475   : > { %v1862_v45 = vadd.f32 %v2882_v60, %v1861_v61  ;;  %v1876_v62 = vmul.f32 %v2884_v7, %v1875_v36  ;;  %v1900_v19 = vor.u32 1.1754944e-38, %v1899_v22  ;;  %vm1898_vm4 = vcmp.eq.f32.partialorder %v1897_v26, 8.507059e+37  ;;  %v4560_v26 = vld [vmem:[#allocation31_spill] sm:$0xff] }
 0x476   : > { %v2886_v5 = vpop.eup %2885  ;;  %2166 = vst [vmem:[%s3976_s11 + $0x110] sm:$0xff] %v2102_v38  ;;  %v4250_v17 = vpop.xlane.xlu1 %1562  ;;  %vm1908_vm5 = vweird.f32 %v4227_v48  ;;  %vm1913_vm6 = vcmp.eq.f32.partialorder %v1912_v59, 8.507059e+37 }
 0x477   : > { %2167 = vst [vmem:[%s3976_s11 + $0x118] sm:$0xff] %v2103_v1  ;;  %v1866_v27 = vsel %vm1865_vm10, %v2882_v60, %v1862_v45  ;;  %v1889_v47 = vmul.f32 %v2886_v5, %v4225_v31  ;;  %v4248_v4 = vpop.xlane.xlu2 %1559  ;;  %v1877_v24 = vadd.f32 %v2884_v7, %v1876_v62  ;;  %vm1894_vm0 = vweird.f32 %v2886_v5 }
 0x478   : > { %v1871_v2 = vsel %vm1868_vm12, %v1870_v30, %v1866_v27  ;;  %2889 = vrcp.f32 %v4248_v4  ;;  %v2888_v44 = vpop.eup %2887  ;;  %vm1895_vm2 = vmor %vm1893_vm1, %vm1894_vm0  ;;  %v1927_v34 = vand.u32 2147483647, %v4248_v4  ;;  %v1929_v23 = vand.u32 2147483648, %v4248_v4 }
 0x479   : > { %v2104_v32 = vmul.f32 %v3870_v3, %v1871_v2  ;;  %v2105_v53 = vmul.f32 %v4556_v13, %v1871_v2  ;;  %v1890_v52 = vsub.f32 1.0, %v1889_v47  ;;  %v1881_v12 = vsel %vm1880_vm15, %v2884_v7, %v1877_v24  ;;  %v4557_v3 = vld [vmem:[#allocation42_spill] sm:$0xff] }
 0x47a   : > { %v1904_v58 = vmul.f32 %v2888_v44, %v4227_v48  ;;  %v1886_v39 = vsel %vm1883_vm14, %v1885_v6, %v1881_v12  ;;  %2891 = vrcp.f32 %v4250_v17  ;;  %vm1909_vm3 = vweird.f32 %v2888_v44 }
 0x47b   : > { %2168 = vst [vmem:[%s3976_s11 + $0x120] sm:$0xff] %v2104_v32  ;;  %v1891_v43 = vmul.f32 %v2886_v5, %v1890_v52  ;;  %v2106_v50 = vmul.f32 %v4557_v3, %v1886_v39  ;;  %v2107_v49 = vmul.f32 %v4558_v8, %v1886_v39  ;;  %vm1910_vm7 = vmor %vm1908_vm5, %vm1909_vm3  ;;  %v1915_v48 = vor.u32 1.1754944e-38, %v1914_v37 }
 0x47c   : > { %2169 = vst [vmem:[%s3976_s11 + $0x128] sm:$0xff] %v2105_v53  ;;  %v1905_v0 = vsub.f32 1.0, %v1904_v58  ;;  %v1942_v1 = vand.u32 2147483647, %v4250_v17  ;;  %vm1923_vm9 = vweird.f32 %v4248_v4  ;;  %v1944_v15 = vand.u32 2147483648, %v4250_v17 }
 0x47d   : > { %v1892_v51 = vadd.f32 %v2886_v5, %v1891_v43  ;;  %2170 = vst [vmem:[%s3976_s11 + $0x130] sm:$0xff] %v2106_v50  ;;  %v1930_v33 = vor.u32 1.1754944e-38, %v1929_v23  ;;  %vm1928_vm12 = vcmp.eq.f32.partialorder %v1927_v34, 8.507059e+37  ;;  %vm1938_vm13 = vweird.f32 %v4250_v17 }
 0x47e   : > { %v2890_v60 = vpop.eup %2889  ;;  %v1906_v55 = vmul.f32 %v2888_v44, %v1905_v0  ;;  %2171 = vst [vmem:[%s3976_s11 + $0x138] sm:$0xff] %v2107_v49  ;;  %v4273_v16 = vpop.xlane.xlu1 %1568  ;;  %vm1943_vm14 = vcmp.eq.f32.partialorder %v1942_v1, 8.507059e+37  ;;  %v1945_v24 = vor.u32 1.1754944e-38, %v1944_v15 }
 0x47f   : > { %v1896_v42 = vsel %vm1895_vm2, %v2886_v5, %v1892_v51  ;;  %v1919_v9 = vmul.f32 %v2890_v60, %v4248_v4  ;;  %v4271_v10 = vpop.xlane.xlu2 %1565  ;;  %vm1924_vm8 = vweird.f32 %v2890_v60  ;;  %v1972_v39 = vand.u32 2147483647, %v4273_v16 }
 0x480   : > { %v1901_v31 = vsel %vm1898_vm4, %v1900_v19, %v1896_v42  ;;  %v1907_v7 = vadd.f32 %v2888_v44, %v1906_v55  ;;  %2893 = vrcp.f32 %v4271_v10  ;;  %v2892_v14 = vpop.eup %2891  ;;  %vm1925_vm10 = vmor %vm1923_vm9, %vm1924_vm8  ;;  %v1957_v13 = vand.u32 2147483647, %v4271_v10  ;;  %v4561_v55 = vld [vmem:[#allocation32_spill] sm:$0xff] }
 0x481   : > { %v2108_v57 = vmul.f32 %v3886_v40, %v1901_v31  ;;  %v2109_v63 = vmul.f32 %v3888_v46, %v1901_v31  ;;  %v1920_v35 = vsub.f32 1.0, %v1919_v9  ;;  %v1934_v29 = vmul.f32 %v2892_v14, %v4250_v17 }
 0x482   : > { %v1911_v25 = vsel %vm1910_vm7, %v2888_v44, %v1907_v7  ;;  %2895 = vrcp.f32 %v4273_v16  ;;  %vm1939_vm11 = vweird.f32 %v2892_v14  ;;  %v1959_v53 = vand.u32 2147483648, %v4271_v10 }
 0x483   : > { %2172 = vst [vmem:[%s3976_s11 + $0x140] sm:$0xff] %v2108_v57  ;;  %v1916_v28 = vsel %vm1913_vm6, %v1915_v48, %v1911_v25  ;;  %v1921_v61 = vmul.f32 %v2890_v60, %v1920_v35  ;;  %v1935_v38 = vsub.f32 1.0, %v1934_v29  ;;  %vm1940_vm15 = vmor %vm1938_vm13, %vm1939_vm11  ;;  %vm1953_vm1 = vweird.f32 %v4271_v10  ;;  %v4562_v48 = vld [vmem:[#allocation33_spill] sm:$0xff]  ;;  %v4563_v25 = vld [vmem:[#allocation34_spill] sm:$0xff] }
 0x484   : > { %2173 = vst [vmem:[%s3976_s11 + $0x148] sm:$0xff] %v2109_v63  ;;  %v2110_v40 = vmul.f32 %v3890_v11, %v1916_v28  ;;  %v2111_v46 = vmul.f32 %v3893_v21, %v1916_v28  ;;  %v1974_v3 = vand.u32 2147483648, %v4273_v16  ;;  %v1960_v8 = vor.u32 1.1754944e-38, %v1959_v53 }
 0x485   : > { %v1922_v36 = vadd.f32 %v2890_v60, %v1921_v61  ;;  %v1936_v5 = vmul.f32 %v2892_v14, %v1935_v38  ;;  %vm1958_vm4 = vcmp.eq.f32.partialorder %v1957_v13, 8.507059e+37  ;;  %vm1968_vm5 = vweird.f32 %v4273_v16 }
 0x486   : > { %v2894_v45 = vpop.eup %2893  ;;  %2174 = vst [vmem:[%s3976_s11 + $0x150] sm:$0xff] %v2110_v40  ;;  %vm1973_vm6 = vcmp.eq.f32.partialorder %v1972_v39, 8.507059e+37  ;;  %v1975_v9 = vor.u32 1.1754944e-38, %v1974_v3  ;;  %v4569_v39 = vld [vmem:[#allocation47_spill] sm:$0xff] }
 0x487   : > { %2175 = vst [vmem:[%s3976_s11 + $0x158] sm:$0xff] %v2111_v46  ;;  %v1926_v30 = vsel %vm1925_vm10, %v2890_v60, %v1922_v36  ;;  %v1949_v11 = vmul.f32 %v2894_v45, %v4271_v10  ;;  %v4294_v21 = vpop.xlane.xlu2 %1571  ;;  %v1937_v27 = vadd.f32 %v2892_v14, %v1936_v5  ;;  %vm1954_vm0 = vweird.f32 %v2894_v45  ;;  %v4565_v5 = vld [vmem:[#allocation36_spill] sm:$0xff] }
 0x488   : > { %v1931_v62 = vsel %vm1928_vm12, %v1930_v33, %v1926_v30  ;;  %2897 = vrcp.f32 %v4294_v21  ;;  %v2896_v47 = vpop.eup %2895  ;;  %v4299_v17 = vpop.xlane.xlu1 %1574  ;;  %vm1955_vm2 = vmor %vm1953_vm1, %vm1954_vm0  ;;  %vm1983_vm9 = vweird.f32 %v4294_v21 }
 0x489   : > { %v2112_v4 = vmul.f32 %v3902_v20, %v1931_v62  ;;  %v2113_v2 = vmul.f32 %v3904_v41, %v1931_v62  ;;  %v1950_v44 = vsub.f32 1.0, %v1949_v11  ;;  %v1941_v32 = vsel %vm1940_vm15, %v2892_v14, %v1937_v27  ;;  %v4559_v20 = vld [vmem:[#allocation30_spill] sm:$0xff] }
 0x48a   : > { %v1964_v6 = vmul.f32 %v2896_v47, %v4273_v16  ;;  %v1946_v52 = vsel %vm1943_vm14, %v1945_v24, %v1941_v32  ;;  %2899 = vrcp.f32 %v4299_v17  ;;  %vm1969_vm3 = vweird.f32 %v2896_v47 }
 0x48b   : > { %2176 = vst [vmem:[%s3976_s11 + $0x160] sm:$0xff] %v2112_v4  ;;  %v1951_v12 = vmul.f32 %v2894_v45, %v1950_v44  ;;  %v2114_v41 = vmul.f32 %v4559_v20, %v1946_v52  ;;  %v2115_v22 = vmul.f32 %v4560_v26, %v1946_v52  ;;  %vm1970_vm7 = vmor %vm1968_vm5, %vm1969_vm3  ;;  %v1989_v14 = vand.u32 2147483648, %v4294_v21  ;;  %v4567_v44 = vld [vmem:[#allocation45_spill] sm:$0xff] }
 0x48c   : > { %2177 = vst [vmem:[%s3976_s11 + $0x168] sm:$0xff] %v2113_v2  ;;  %v1965_v58 = vsub.f32 1.0, %v1964_v6  ;;  %v2004_v28 = vand.u32 2147483648, %v4299_v17  ;;  %v2002_v46 = vand.u32 2147483647, %v4299_v17  ;;  %vm1998_vm13 = vweird.f32 %v4299_v17  ;;  %v4566_v2 = vld [vmem:[#allocation44_spill] sm:$0xff] }
 0x48d   : > { %v1952_v43 = vadd.f32 %v2894_v45, %v1951_v12  ;;  %2178 = vst [vmem:[%s3976_s11 + $0x170] sm:$0xff] %v2114_v41  ;;  %v1990_v61 = vor.u32 1.1754944e-38, %v1989_v14 }
 0x48e   : > { %v2898_v50 = vpop.eup %2897  ;;  %v1966_v49 = vmul.f32 %v2896_v47, %v1965_v58  ;;  %2179 = vst [vmem:[%s3976_s11 + $0x178] sm:$0xff] %v2115_v22  ;;  %v2005_v11 = vor.u32 1.1754944e-38, %v2004_v28  ;;  %vm2003_vm15 = vcmp.eq.f32.partialorder %v2002_v46, 8.507059e+37  ;;  %v4568_v22 = vld [vmem:[#allocation46_spill] sm:$0xff] }
 0x48f   : > { %v1956_v0 = vsel %vm1955_vm2, %v2894_v45, %v1952_v43  ;;  %v1979_v59 = vmul.f32 %v2898_v50, %v4294_v21  ;;  %vm1984_vm8 = vweird.f32 %v2898_v50  ;;  %v4564_v45 = vld [vmem:[#allocation35_spill] sm:$0xff] }
 0x490   : > { %v1961_v51 = vsel %vm1958_vm4, %v1960_v8, %v1956_v0  ;;  %v1967_v37 = vadd.f32 %v2896_v47, %v1966_v49  ;;  %v2900_v60 = vpop.eup %2899  ;;  %v1578_v31 = vpop.xlane.xlu2 %1577  ;;  %vm1985_vm10 = vmor %vm1983_vm9, %vm1984_vm8 }
 0x491   : > { %v2116_v19 = vmul.f32 %v3916_v56, %v1961_v51  ;;  %v2117_v42 = vmul.f32 %v4561_v55, %v1961_v51  ;;  %v1980_v10 = vsub.f32 1.0, %v1979_v59  ;;  %v1994_v57 = vmul.f32 %v2900_v60, %v4299_v17 }
 0x492   : > { %v1971_v7 = vsel %vm1970_vm7, %v2896_v47, %v1967_v37  ;;  %2901 = vrcp.f32 %v1578_v31  ;;  %v1987_v56 = vand.u32 2147483647, %v4294_v21  ;;  %vm1999_vm11 = vweird.f32 %v2900_v60 }
 0x493   : > { %2180 = vst [vmem:[%s3976_s11 + $0x180] sm:$0xff] %v2116_v19  ;;  %v1976_v16 = vsel %vm1973_vm6, %v1975_v9, %v1971_v7  ;;  %v1981_v63 = vmul.f32 %v2898_v50, %v1980_v10  ;;  %v1995_v23 = vsub.f32 1.0, %v1994_v57  ;;  %vm2000_vm14 = vmor %vm1998_vm13, %vm1999_vm11  ;;  %v2019_v32 = vand.u32 2147483648, %v1578_v31  ;;  %v4571_v10 = vld [vmem:[#allocation49_spill] sm:$0xff] }
 0x494   : > { %2181 = vst [vmem:[%s3976_s11 + $0x188] sm:$0xff] %v2117_v42  ;;  %v2118_v35 = vmul.f32 %v4562_v48, %v1976_v16  ;;  %v2119_v34 = vmul.f32 %v4563_v25, %v1976_v16  ;;  %vm1988_vm12 = vcmp.eq.f32.partialorder %v1987_v56, 8.507059e+37  ;;  %v2017_v53 = vand.u32 2147483647, %v1578_v31  ;;  %v4570_v42 = vld [vmem:[#allocation48_spill] sm:$0xff]  ;;  %v4574_v25 = vld [vmem:[#allocation50_spill] sm:$0xff] }
 0x495   : > { %v1982_v29 = vadd.f32 %v2898_v50, %v1981_v63  ;;  %v1996_v40 = vmul.f32 %v2900_v60, %v1995_v23  ;;  %vm2013_vm1 = vweird.f32 %v1578_v31  ;;  %v2020_v52 = vor.u32 1.1754944e-38, %v2019_v32  ;;  %v4575_v23 = vld [vmem:[#allocation51_spill] sm:$0xff] }
 0x496   : > { %2182 = vst [vmem:[%s3976_s11 + $0x190] sm:$0xff] %v2118_v35  ;;  %vm2018_vm3 = vcmp.eq.f32.partialorder %v2017_v53, 8.507059e+37 }
 0x497   : > { %2183 = vst [vmem:[%s3976_s11 + $0x198] sm:$0xff] %v2119_v34  ;;  %v1986_v38 = vsel %vm1985_vm10, %v2898_v50, %v1982_v29  ;;  %v1997_v15 = vadd.f32 %v2900_v60, %v1996_v40 }
 0x498   : > { %v2902_v1 = vpop.eup %2901  ;;  %v1991_v36 = vsel %vm1988_vm12, %v1990_v61, %v1986_v38  ;;  %v1581_v27 = vpop.xlane.xlu0 %1580 }
 0x499   : > { %v2120_v33 = vmul.f32 %v4564_v45, %v1991_v36  ;;  %v2121_v30 = vmul.f32 %v4565_v5, %v1991_v36  ;;  %v2009_v21 = vmul.f32 %v2902_v1, %v1578_v31  ;;  %v2001_v62 = vsel %vm2000_vm14, %v2900_v60, %v1997_v15 }
 0x49a   : > { %v2006_v47 = vsel %vm2003_vm15, %v2005_v11, %v2001_v62  ;;  %2903 = vrcp.f32 %v1581_v27  ;;  %vm2014_vm0 = vweird.f32 %v2902_v1  ;;  %v2034_v8 = vand.u32 2147483648, %v1581_v27 }
 0x49b   : > { %2184 = vst [vmem:[%s3976_s11 + $0x1a0] sm:$0xff] %v2120_v33  ;;  %v2010_v4 = vsub.f32 1.0, %v2009_v21  ;;  %v2122_v24 = vmul.f32 %v4566_v2, %v2006_v47  ;;  %v2123_v17 = vmul.f32 %v4567_v44, %v2006_v47  ;;  %vm2015_vm2 = vmor %vm2013_vm1, %vm2014_vm0  ;;  %v2032_v0 = vand.u32 2147483647, %v1581_v27 }
 0x49c   : > { %2185 = vst [vmem:[%s3976_s11 + $0x1a8] sm:$0xff] %v2121_v30  ;;  %vm2028_vm5 = vweird.f32 %v1581_v27  ;;  %v2035_v51 = vor.u32 1.1754944e-38, %v2034_v8 }
 0x49d   : > { %v2011_v13 = vmul.f32 %v2902_v1, %v2010_v4  ;;  %2186 = vst [vmem:[%s3976_s11 + $0x1b0] sm:$0xff] %v2122_v24  ;;  %vm2033_vm7 = vcmp.eq.f32.partialorder %v2032_v0, 8.507059e+37 }
 0x49e   : > { %2187 = vst [vmem:[%s3976_s11 + $0x1b8] sm:$0xff] %v2123_v17 }
 0x49f   : > { %v2012_v6 = vadd.f32 %v2902_v1, %v2011_v13 }
 0x4a0   : > { %v2904_v12 = vpop.eup %2903 }
 0x4a1   : > { %v2016_v20 = vsel %vm2015_vm2, %v2902_v1, %v2012_v6  ;;  %v2024_v26 = vmul.f32 %v2904_v12, %v1581_v27  ;;  %v1584_v3 = vpop.xlane.xlu1 %1583  ;;  %vm2029_vm4 = vweird.f32 %v2904_v12 }
 0x4a2   : > { %v2021_v41 = vsel %vm2018_vm3, %v2020_v52, %v2016_v20  ;;  %2905 = vrcp.f32 %v1584_v3  ;;  %vm2030_vm6 = vmor %vm2028_vm5, %vm2029_vm4  ;;  %v2049_v14 = vand.u32 2147483648, %v1584_v3  ;;  %v2047_v16 = vand.u32 2147483647, %v1584_v3 }
 0x4a3   : > { %v2124_v58 = vmul.f32 %v4568_v22, %v2021_v41  ;;  %v2125_v43 = vmul.f32 %v4569_v39, %v2021_v41  ;;  %v2025_v50 = vsub.f32 1.0, %v2024_v26  ;;  %vm2043_vm9 = vweird.f32 %v1584_v3 }
 0x4a4   : > { %v2050_v56 = vor.u32 1.1754944e-38, %v2049_v14  ;;  %vm2048_vm11 = vcmp.eq.f32.partialorder %v2047_v16, 8.507059e+37 }
 0x4a5   : > { %2188 = vst [vmem:[%s3976_s11 + $0x1c0] sm:$0xff] %v2124_v58  ;;  %v2026_v49 = vmul.f32 %v2904_v12, %v2025_v50 }
 0x4a6   : > { %2189 = vst [vmem:[%s3976_s11 + $0x1c8] sm:$0xff] %v2125_v43 }
 0x4a7   : > { %v2027_v59 = vadd.f32 %v2904_v12, %v2026_v49 }
 0x4a8   : > { %v2906_v37 = vpop.eup %2905 }
 0x4a9   : > { %v2031_v60 = vsel %vm2030_vm6, %v2904_v12, %v2027_v59  ;;  %v2039_v55 = vmul.f32 %v2906_v37, %v1584_v3  ;;  %vm2044_vm8 = vweird.f32 %v2906_v37 }
 0x4aa   : > { %v2036_v19 = vsel %vm2033_vm7, %v2035_v51, %v2031_v60  ;;  %vm2045_vm10 = vmor %vm2043_vm9, %vm2044_vm8 }
 0x4ab   : > { %v2126_v9 = vmul.f32 %v4570_v42, %v2036_v19  ;;  %v2127_v31 = vmul.f32 %v4571_v10, %v2036_v19  ;;  %v2040_v7 = vsub.f32 1.0, %v2039_v55 }
 0x4ad   : > { %2190 = vst [vmem:[%s3976_s11 + $0x1d0] sm:$0xff] %v2126_v9  ;;  %v2041_v57 = vmul.f32 %v2906_v37, %v2040_v7 }
 0x4ae   : > { %2191 = vst [vmem:[%s3976_s11 + $0x1d8] sm:$0xff] %v2127_v31 }
 0x4af   : > { %v2042_v63 = vadd.f32 %v2906_v37, %v2041_v57 }
 0x4b1   : > { %v2046_v48 = vsel %vm2045_vm10, %v2906_v37, %v2042_v63 }
 0x4b2   : > { %v2051_v35 = vsel %vm2048_vm11, %v2050_v56, %v2046_v48 }
 0x4b3   : > { %v2128_v34 = vmul.f32 %v4574_v25, %v2051_v35  ;;  %v2129_v29 = vmul.f32 %v4575_v23, %v2051_v35 }
 0x4b5   : > { %2192 = vst [vmem:[%s3976_s11 + $0x1e0] sm:$0xff] %v2128_v34 }
 0x4b6   : > { %2193 = vst [vmem:[%s3976_s11 + $0x1e8] sm:$0xff] %v2129_v29 }
 0x4d5   : > { %v1587_v28 = vpop.xlane.xlu2 %1586 }
 0x4d6   : > { %2907 = vrcp.f32 %v1587_v28  ;;  %v2064_v38 = vand.u32 2147483648, %v1587_v28  ;;  %v2062_v36 = vand.u32 2147483647, %v1587_v28  ;;  %vm2058_vm13 = vweird.f32 %v1587_v28 }
 0x4d8   : > { %v2065_v45 = vor.u32 1.1754944e-38, %v2064_v38  ;;  %vm2063_vm15 = vcmp.eq.f32.partialorder %v2062_v36, 8.507059e+37 }
 0x4dc   : > { %v2908_v61 = vpop.eup %2907 }
 0x4dd   : > { %v2054_v40 = vmul.f32 %v2908_v61, %v1587_v28  ;;  %vm2059_vm12 = vweird.f32 %v2908_v61 }
 0x4de   : > { %vm2060_vm14 = vmor %vm2058_vm13, %vm2059_vm12 }
 0x4df   : > { %v2055_v46 = vsub.f32 1.0, %v2054_v40 }
 0x4e1   : > { %v2056_v1 = vmul.f32 %v2908_v61, %v2055_v46 }
 0x4e3   : > { %v2057_v15 = vadd.f32 %v2908_v61, %v2056_v1 }
 0x4e5   : > { %v2061_v33 = vsel %vm2060_vm14, %v2908_v61, %v2057_v15 }
 0x4e6   : > { %v2066_v5 = vsel %vm2063_vm15, %v2065_v45, %v2061_v33 }
 0x4e7   : > { %v2130_v30 = vmul.f32 %v4175_v54, %v2066_v5  ;;  %v2131_v11 = vmul.f32 %v4185_v18, %v2066_v5 }
 0x4e9   : > { %2194 = vst [vmem:[%s3976_s11 + $0x1f0] sm:$0xff] %v2130_v30 }
 0x4ea   : > { %2195 = vst [vmem:[%s3976_s11 + $0x1f8] sm:$0xff] %v2131_v11 }
 0x4eb   : > { %3056 = shalt.err (!%p3053_p10)
}
 0x4ec   : > { %s3193_s18 = smov 256   ;;  %s3194_s25 = smov 16  }
 0x4ed   : > { %2578 = dma.vmem_to_hbm [thread:$0]  (%p3374_p1), %s2215_s10, 8192, %s2217_s4, %s2197_s0, %s3193_s18, %s3193_s18, %s3194_s25  }
 0x4ee PF: > { %p2598_p12 = scmp.ge.s32.totalorder %s3187_s28, 2  ;;  %s2231_s11 = sand.u32 1, %s3135_s15  }
 0x4ef   : > { %s2232_s21 = scalar_lea.sflag [#allocation5], %s2231_s11 }
 0x4f0   : > { %p2594_p3 = pnand %p2598_p12, %p3390_p4 }
 0x4f2   : > { %p2595_p13 = pneg %p2594_p3 }
 0x4f4   : > { %3130 = dma.done.wait (%p2595_p13), %s2232_s21, 8192  }
 0x4f5   : > { %3132 = vsyncadd (%p2595_p13), %s2232_s21, 4294959104  ;;  %s26_s28 = sadd.s32 1, %s3187_s28   ;;  %s4578_s7 = sld [smem:[#allocation29_spill]] }
 0x4f6   : > { %p4378_p0 = scmp.ge.s32.totalorder %s26_s28, 10   ;;  %s4579_s8 = sld [smem:[#allocation17_spill]] }
 0x4f7   : > { %s4580_s20 = sld [smem:[#allocation27_spill]]  ;;  %s4588_s15 = smov %s3139_s16 }
 0x4f8   : > { %s4581_s21 = sld [smem:[#allocation18_spill]]  ;;  %s4589_s16 = smov %s3143_s17 }
 0x4f9   : > { %s4582_s22 = sld [smem:[#allocation19_spill]]  ;;  %s4591_s18 = smov %s3151_s19 }
 0x4fa   : > { %s4583_s23 = sld [smem:[#allocation28_spill]]  ;;  %25 = sbr.rel (!%p4378_p0) target bundleno = 19 (0x13), region = 122 }
 0x4fb   : > { %s4584_s24 = sld [smem:[#allocation22_spill]]  ;;  %s4590_s17 = smov %s4578_s7 }
 0x4fc   : > { %s4585_s25 = sld [smem:[#allocation23_spill]]  ;;  %s4592_s19 = smov %s4579_s8 }
 0x4fd   : > { %s4586_s26 = sld [smem:[#allocation25_spill]] }
 0x4fe   : > { %s4587_s27 = sld [smem:[#allocation26_spill]] }
 0x4ff   :  { %2238 = vsyncpa [#allocation4], 1 }
 0x500   :  { %2240 = vsyncpa [#allocation4 + $0x1], 1 }
 0x501   :  { %2241 = vsyncpa [#allocation7], 1 }
 0x502   :  { %2243 = vsyncpa [#allocation7 + $0x1], 1 }
 0x503   :  { %2244 = vsyncpa [#allocation10], 1 }
 0x504   :  { %2246 = vsyncpa [#allocation10 + $0x1], 1 }
 0x505   :  { %2247 = vsyncpa [#allocation5], 1 }
 0x506   :  { %2249 = vsyncpa [#allocation5 + $0x1], 1 }

</bundles_post_ra>
